<compile_context>
chip_gen: v7x
topology: tpu7x:2x2x1
jax: 0.10.0
libtpu: 0.0.40
codegen_flags: <defaults>
</compile_context>

<pallas_src>
import jax
import jax.numpy as jnp
from jax import lax
from jax.experimental import pallas as pl
from jax.experimental.pallas import tpu as pltpu


def _vq_kernel(x_ref, cbt_ref, hsq_ref, idx_ref):
    """One row-tile of nearest-codebook search.

    x_ref  : (TM, D)     f32  input rows
    cbt_ref: (D, K_pad)  f32  pre-transposed, lane-padded codebook (resident every step)
    hsq_ref: (1, K_pad)  f32  0.5*||c_k||^2 (+inf in padded columns)
    idx_ref: (1, TM)     i32  argmin indices (lane-dense output block)
    """
    x = x_ref[...]                                                        # (TM, D)
    # MXU: x @ cb^T — codebook already transposed in the wrapper, no in-kernel transpose.
    xc = jnp.dot(x, cbt_ref[...], preferred_element_type=jnp.float32)    # (TM, K_pad)
    # argmin_k (||x||^2 + ||c||^2 - 2 x.c)  ==  argmin_k (0.5*||c||^2 - x.c)
    scores = hsq_ref[...] - xc                                            # (TM, K_pad)

    k_pad = scores.shape[1]
    row_min = jnp.min(scores, axis=1, keepdims=True)                      # (TM, 1) XLU reduce
    lane_ids = lax.broadcasted_iota(jnp.int32, scores.shape, 1)
    # Fused min+index: first minimal index (same tie-break as torch.min / jnp.argmin).
    # Padded K columns have +inf scores, so they can never be selected.
    idx = jnp.min(jnp.where(scores == row_min, lane_ids, k_pad), axis=1)  # (TM,)
    idx_ref[0, :] = idx.astype(jnp.int32)


def vq_embedding_forward(z_e_x, codebook, *, tm=256):
    """Pallas equivalent of VQEmbedding.forward / VectorQuantization.

    z_e_x:    (..., D) float array
    codebook: (K, D)   float array (nn.Embedding weight)
    returns:  (...,)   int32 nearest-codebook indices
    """
    *lead, D = z_e_x.shape
    K, D2 = codebook.shape
    assert D == D2

    x = z_e_x.reshape(-1, D).astype(jnp.float32)
    n = x.shape[0]

    n_tiles = (n + tm - 1) // tm            # cdiv: general n; padded rows discarded below
    n_pad = n_tiles * tm
    k_pad = ((K + 127) // 128) * 128        # full 128-lane / MXU-output tiles

    if n_pad != n:
        x = jnp.pad(x, ((0, n_pad - n), (0, 0)))

    cb = codebook.astype(jnp.float32)
    # Hoisted, grid-invariant codebook-side work (done once, not per grid step):
    cb_t = jnp.zeros((D, k_pad), jnp.float32).at[:, :K].set(cb.T)
    half_cb_sqr = (jnp.full((1, k_pad), jnp.inf, jnp.float32)
                   .at[0, :K].set(0.5 * jnp.sum(cb * cb, axis=1)))

    out = pl.pallas_call(
        _vq_kernel,
        out_shape=jax.ShapeDtypeStruct((n_tiles, tm), jnp.int32),
        grid_spec=pltpu.PrefetchScalarGridSpec(
            num_scalar_prefetch=0,
            grid=(n_tiles,),
            in_specs=[
                pl.BlockSpec((tm, D), lambda i: (i, 0)),        # input row tile
                pl.BlockSpec((D, k_pad), lambda i: (0, 0)),     # resident codebook^T
                pl.BlockSpec((1, k_pad), lambda i: (0, 0)),     # resident 0.5*||c||^2
            ],
            out_specs=pl.BlockSpec((1, tm), lambda i: (i, 0)),  # lane-dense index row
        ),
        compiler_params=pltpu.CompilerParams(
            dimension_semantics=("parallel",),                  # rows shard across TCs
        ),
    )(x, cb_t, half_cb_sqr)

    # Perf notes (not needed at these tiny shapes):
    #  * For large K*D, single-buffer the resident codebook (pipeline_mode=pl.Buffered(1))
    #    or K-tile it with an online (min, argmin) VMEM accumulator to fit v7x's 64 MiB VMEM.
    #  * On v6e, casting just the matmul operands to bf16 is a further MXU win for large D
    #    (kept f32 here to exactly preserve torch's f32 argmin / tie behaviour).
    #  * Sweep tm in 256-1024, but keep grid >= ~4 steps so both v7x TensorCores stay busy.

    latents = out.reshape(n_pad)[:n]
    return latents.reshape(tuple(lead))


def make_vq_embedding_params(K, D, key):
    # nn.Embedding(K, D).weight.data.uniform_(-1/K, 1/K)
    return jax.random.uniform(key, (K, D), dtype=jnp.float32,
                              minval=-1.0 / K, maxval=1.0 / K)


if __name__ == "__main__":
    # Small shapes consistent with the module: z_e_x (..., D), codebook (K, D).
    # Leading dims (2, 9, 7) -> n = 126 rows: not a multiple of tm, exercises pad + slice
    # and the reshape of latents back to the leading shape.
    K, D = 64, 32
    lead_shape = (2, 9, 7)

    key = jax.random.PRNGKey(0)
    k_cb, k_x = jax.random.split(key)

    codebook = make_vq_embedding_params(K, D, k_cb)
    z_e_x = jax.random.normal(k_x, lead_shape + (D,), dtype=jnp.float32)

    latents = jax.block_until_ready(vq_embedding_forward(z_e_x, codebook))

    # Reference: exact PyTorch formula (||x||^2 + ||c||^2 - 2 x.c, first-min index).
    x_flat = z_e_x.reshape(-1, D)
    dist = (jnp.sum(x_flat ** 2, axis=1, keepdims=True)
            + jnp.sum(codebook ** 2, axis=1)[None, :]
            - 2.0 * x_flat @ codebook.T)
    ref_idx = jnp.argmin(dist, axis=1).astype(jnp.int32)

    assert latents.shape == lead_shape
    assert latents.dtype == jnp.int32
    lat_flat = latents.reshape(-1)
    # Tie-tolerant correctness check: any disagreement with the reference argmin must be a
    # floating-point near-tie (kernel uses the argmin-equivalent 0.5*||c||^2 - x.c formula).
    d_kernel = jnp.take_along_axis(dist, lat_flat[:, None], axis=1)[:, 0]
    d_best = jnp.min(dist, axis=1)
    assert bool(jnp.all((lat_flat == ref_idx) | (d_kernel <= d_best + 1e-3)))
    assert float(jnp.mean((lat_flat == ref_idx).astype(jnp.float32))) > 0.95

    print("KERNEL_OK")
</pallas_src>

<mosaic_0001>
module attributes {stable_mosaic.version = 11 : i64} {
  func.func @_vq_kernel(%arg0: i32, %arg1: memref<256x32xf32, #tpu.memory_space<vmem>>, %arg2: memref<32x128xf32, #tpu.memory_space<vmem>>, %arg3: memref<1x128xf32, #tpu.memory_space<vmem>>, %arg4: memref<1x256xi32, #tpu.memory_space<vmem>>) attributes {dimension_semantics = [#tpu.dimension_semantics<parallel>], iteration_bounds = array<i64: 1>, scalar_prefetch = 0 : i64, scratch_operands = 0 : i64, tpu.core_type = #tpu.core_type<tc>, window_params = [{transform_indices = @transform_0, window_bounds = array<i64: 256, 32>}, {pipeline_mode = #tpu.pipeline_mode<synchronous>, transform_indices = @transform_1, window_bounds = array<i64: 32, 128>}, {pipeline_mode = #tpu.pipeline_mode<synchronous>, transform_indices = @transform_2, window_bounds = array<i64: 1, 128>}, {transform_indices = @transform_3, window_bounds = array<i64: 1, 256>}]} {
    %c0 = arith.constant 0 : index
    %c0_0 = arith.constant 0 : index
    %0 = vector.load %arg1[%c0, %c0_0] : memref<256x32xf32, #tpu.memory_space<vmem>>, vector<256x32xf32>
    %c0_1 = arith.constant 0 : index
    %c0_2 = arith.constant 0 : index
    %1 = vector.load %arg2[%c0_1, %c0_2] : memref<32x128xf32, #tpu.memory_space<vmem>>, vector<32x128xf32>
    %cst = arith.constant dense<0.000000e+00> : vector<256x128xf32>
    %2 = tpu.matmul %0, %1, %cst {dimension_numbers = #tpu.dot_dimension_numbers<[1], [0], [0], [1], [0, 0, 1, 1], [], []>} : vector<256x32xf32>, vector<32x128xf32>, vector<256x128xf32> -> vector<256x128xf32>
    %c0_3 = arith.constant 0 : index
    %c0_4 = arith.constant 0 : index
    %3 = vector.load %arg3[%c0_3, %c0_4] : memref<1x128xf32, #tpu.memory_space<vmem>>, vector<1x128xf32>
    %4 = vector.broadcast %3 : vector<1x128xf32> to vector<256x128xf32>
    %5 = arith.subf %4, %2 : vector<256x128xf32>
    %cst_5 = arith.constant dense<0x7F800000> : vector<256xf32>
    %6 = vector.multi_reduction <minimumf>, %5, %cst_5 [1] : vector<256x128xf32> to vector<256xf32>
    %7 = vector.shape_cast %6 : vector<256xf32> to vector<256x1xf32>
    %8 = tpu.iota {dimensions = array<i32: 1>} : vector<256x128xi32>
    %9 = vector.broadcast %7 : vector<256x1xf32> to vector<256x128xf32>
    %10 = arith.cmpf oeq, %5, %9 : vector<256x128xf32>
    %c128_i32 = arith.constant 128 : i32
    %11 = vector.broadcast %c128_i32 : i32 to vector<256x128xi32>
    %12 = arith.select %10, %8, %11 : vector<256x128xi1>, vector<256x128xi32>
    %cst_6 = arith.constant dense<2147483647> : vector<256xi32>
    %13 = vector.multi_reduction <minsi>, %12, %cst_6 [1] : vector<256x128xi32> to vector<256xi32>
    %c0_7 = arith.constant 0 : index
    %c0_8 = arith.constant 0 : index
    %14 = vector.load %arg4[%c0_7, %c0_8] : memref<1x256xi32, #tpu.memory_space<vmem>>, vector<1x256xi32>
    %15 = vector.shape_cast %14 : vector<1x256xi32> to vector<256xi32>
    %16 = vector.shape_cast %13 : vector<256xi32> to vector<1x256xi32>
    tpu.vector_store %arg4[%c0_7, %c0_8], %16 {strides = array<i32>} : memref<1x256xi32, #tpu.memory_space<vmem>>, vector<1x256xi32>,
    return
  }
  func.func @transform_0(%arg0: i32) -> (i32, i32) {
    %c0_i32 = arith.constant 0 : i32
    %c0_i32_0 = arith.constant 0 : i32
    return %arg0, %c0_i32 : i32, i32
  }
  func.func @transform_1(%arg0: i32) -> (i32, i32) {
    %c0_i32 = arith.constant 0 : i32
    %c0_i32_0 = arith.constant 0 : i32
    %c0_i32_1 = arith.constant 0 : i32
    return %c0_i32, %c0_i32_0 : i32, i32
  }
  func.func @transform_2(%arg0: i32) -> (i32, i32) {
    %c0_i32 = arith.constant 0 : i32
    %c0_i32_0 = arith.constant 0 : i32
    %c0_i32_1 = arith.constant 0 : i32
    return %c0_i32, %c0_i32_0 : i32, i32
  }
  func.func @transform_3(%arg0: i32) -> (i32, i32) {
    %c0_i32 = arith.constant 0 : i32
    %c0_i32_0 = arith.constant 0 : i32
    return %arg0, %c0_i32 : i32, i32
  }
}

</mosaic_0001>

<bundles_post_ra>
// kernel: tpu_custom_call.1
= control target key start
LH: loop header
LB: loop body
LE: loop exit
PB: predicated region body
PF: predicated region fallthrough
CT: control target
= control target key end

     0   :  { %vm51_vm0 = vcmask 261120   ;;  %s5770_s0 = inlined_call_operand.vmem [shape: f32[256,32], index: 0, kind: input, shape index: {}]   ;;  %s5771_s1 = inlined_call_operand.vmem [shape: f32[32,128], index: 1, kind: input, shape index: {}]   ;;  %s5772_s2 = inlined_call_operand.vmem [shape: f32[1,128], index: 2, kind: input, shape index: {}]   ;;  %s5773_s3 = inlined_call_operand.hbm [shape: s32[1,256], index: 3, kind: output, shape index: {}]  }
   0x1   :  { %v47_v0 = vld [vmem:[%s5771_s1] sm:$0xff]  ;;  %v48_v1 = vld [vmem:[%s5771_s1 + $0x8] sm:$0xff]  ;;  %v49_v2 = vld [vmem:[%s5771_s1 + $0x10] sm:$0xff] }
   0x2   :  { %v4025_v3 = vpack.c.bf16 %v48_v1, %v47_v0  ;;  %v50_v4 = vld [vmem:[%s5771_s1 + $0x18] sm:$0xff]  ;;  %v15_v5 = vld [vmem:[%s5770_s0] sm:$0xff]  ;;  %v16_v8 = vld [vmem:[%s5770_s0 + $0x8] sm:$0xff] }
   0x3   :  { %v31_v6 = vld [vmem:[%s5770_s0 + $0x80] sm:$0xff]  ;;  %v4029_v7 = vpack.c.bf16 %v50_v4, %v49_v2  ;;  %3977 = vmatprep.mubr.msk.f32.mxu0 %vm51_vm0, %v15_v5  ;;  %v32_v9 = vld [vmem:[%s5770_s0 + $0x88] sm:$0xff]  ;;  %v17_v10 = vld [vmem:[%s5770_s0 + $0x10] sm:$0xff] }
   0x4   :  { %4001 = vmatprep.mubr.msk.f32.mxu1 %vm51_vm0, %v31_v6  ;;  %4026 = vmatprep.subr.bf16.mxu0 %v4025_v3  ;;  %v33_v11 = vld [vmem:[%s5770_s0 + $0x90] sm:$0xff]  ;;  %v18_v12 = vld [vmem:[%s5770_s0 + $0x18] sm:$0xff] }
   0x5   :  { %4033 = vmatprep.subr.bf16.mxu1 %v4025_v3  ;;  %4028 = vmatpush3.bf16.msra.mxu0 %v4025_v3  ;;  %v34_v13 = vld [vmem:[%s5770_s0 + $0x98] sm:$0xff] }
   0x6   :  { %4035 = vmatpush3.bf16.msra.mxu1 %v4025_v3  ;;  %4030 = vmatprep.subr.bf16.mxu0 %v4029_v7 }
   0x7   :  { %4034 = vmatprep.subr.bf16.mxu1 %v4029_v7 }
   0x9   :  { %4032 = vmatpush3.bf16.msra.mxu0 %v4029_v7 }
   0xa   :  { %4036 = vmatpush3.bf16.msra.mxu1 %v4029_v7 }
   0xc   :  { %3978 = vmatmul.mubr.msk.f32.vlgmr.msra.gmra.mrb[0].mxu0 %vm51_vm0, %v16_v8 }
   0xd   :  { %4002 = vmatmul.mubr.msk.f32.vlgmr.msra.gmra.mrb[0].mxu1 %vm51_vm0, %v32_v9  ;;  %3980 = vmatprep.mubr.msk.f32.mxu0 %vm51_vm0, %v17_v10 }
   0xe   :  { %4004 = vmatprep.mubr.msk.f32.mxu1 %vm51_vm0, %v33_v11 }
   0xf   :  { %8 = vsyncpa [#allocation3], 0  ;;  %v19_v14 = vld [vmem:[%s5770_s0 + $0x20] sm:$0xff]  ;;  %v20_v16 = vld [vmem:[%s5770_s0 + $0x28] sm:$0xff] }
  0x10   :  { %v35_v15 = vld [vmem:[%s5770_s0 + $0xa0] sm:$0xff]  ;;  %3981 = vmatmul.mubr.msk.f32.gmra.mrb[2].mxu0 %vm51_vm0, %v18_v12  ;;  %v36_v17 = vld [vmem:[%s5770_s0 + $0xa8] sm:$0xff]  ;;  %v21_v18 = vld [vmem:[%s5770_s0 + $0x30] sm:$0xff] }
  0x11   :  { %4005 = vmatmul.mubr.msk.f32.gmra.mrb[2].mxu1 %vm51_vm0, %v34_v13  ;;  %3983 = vmatprep.mubr.msk.f32.mxu0 %vm51_vm0, %v19_v14  ;;  %v37_v19 = vld [vmem:[%s5770_s0 + $0xb0] sm:$0xff]  ;;  %v22_v20 = vld [vmem:[%s5770_s0 + $0x38] sm:$0xff]  ;;  %v23_v22 = vld [vmem:[%s5770_s0 + $0x40] sm:$0xff] }
  0x12   :  { %4007 = vmatprep.mubr.msk.f32.mxu1 %vm51_vm0, %v35_v15  ;;  %v38_v21 = vld [vmem:[%s5770_s0 + $0xb8] sm:$0xff]  ;;  %v39_v23 = vld [vmem:[%s5770_s0 + $0xc0] sm:$0xff]  ;;  %v24_v24 = vld [vmem:[%s5770_s0 + $0x48] sm:$0xff] }
  0x13   :  { %v40_v25 = vld [vmem:[%s5770_s0 + $0xc8] sm:$0xff]  ;;  %v25_v26 = vld [vmem:[%s5770_s0 + $0x50] sm:$0xff]  ;;  %v26_v28 = vld [vmem:[%s5770_s0 + $0x58] sm:$0xff] }
  0x14   :  { %3984 = vmatmul.mubr.msk.f32.gmra.mrb[4].mxu0 %vm51_vm0, %v20_v16  ;;  %v41_v27 = vld [vmem:[%s5770_s0 + $0xd0] sm:$0xff]  ;;  %v42_v29 = vld [vmem:[%s5770_s0 + $0xd8] sm:$0xff]  ;;  %v27_v30 = vld [vmem:[%s5770_s0 + $0x60] sm:$0xff] }
  0x15   :  { %4008 = vmatmul.mubr.msk.f32.gmra.mrb[4].mxu1 %vm51_vm0, %v36_v17  ;;  %3986 = vmatprep.mubr.msk.f32.mxu0 %vm51_vm0, %v21_v18  ;;  %v43_v31 = vld [vmem:[%s5770_s0 + $0xe0] sm:$0xff]  ;;  %v28_v32 = vld [vmem:[%s5770_s0 + $0x68] sm:$0xff]  ;;  %v29_v34 = vld [vmem:[%s5770_s0 + $0x70] sm:$0xff] }
  0x16   :  { %4010 = vmatprep.mubr.msk.f32.mxu1 %vm51_vm0, %v37_v19  ;;  %v44_v33 = vld [vmem:[%s5770_s0 + $0xe8] sm:$0xff]  ;;  %v45_v35 = vld [vmem:[%s5770_s0 + $0xf0] sm:$0xff]  ;;  %v30_v36 = vld [vmem:[%s5770_s0 + $0x78] sm:$0xff] }
  0x17   :  { %v46_v37 = vld [vmem:[%s5770_s0 + $0xf8] sm:$0xff]  ;;  %v4232_v38 = vld [vmem:[%s5772_s2] ss:$0 sm:$0xff]  ;;  %s4068_s0 = smov [#allocation2]  }
  0x18   :  { %3987 = vmatmul.mubr.msk.f32.gmra.mrb[6].mxu0 %vm51_vm0, %v22_v20  ;;  %s3892_s2 = sshll.u32 %s4068_s0, 4  ;;  %s3893_s2 = int_to_ptr.vmem [resolvable:$true] %s3892_s2 }
  0x19   :  { %4011 = vmatmul.mubr.msk.f32.gmra.mrb[6].mxu1 %vm51_vm0, %v38_v21  ;;  %3989 = vmatprep.mubr.msk.f32.mxu0 %vm51_vm0, %v23_v22  ;;  %s4042_s29 = scalar_lea.vmem %s3893_s2, 32  ;;  %p4047_p1 = scmp.lt.s32.totalorder %s3893_s2, %s3893_s2 }
  0x1a   :  { %4013 = vmatprep.mubr.msk.f32.mxu1 %vm51_vm0, %v39_v23  ;;  %p4043_p0 = scmp.ne.s32.totalorder %s3893_s2, %s4042_s29  ;;  %p4048_p2 = scmp.lt.s32.totalorder %s4042_s29, %s4042_s29 }
  0x1c   :  { %3990 = vmatmul.mubr.msk.f32.gmra.mrb[8].mxu0 %vm51_vm0, %v24_v24  ;;  %p4049_p3 = por %p4048_p2, %p4047_p1 }
  0x1d   :  { %4014 = vmatmul.mubr.msk.f32.gmra.mrb[8].mxu1 %vm51_vm0, %v40_v25  ;;  %3992 = vmatprep.mubr.msk.f32.mxu0 %vm51_vm0, %v25_v26 }
  0x1e   :  { %4016 = vmatprep.mubr.msk.f32.mxu1 %vm51_vm0, %v41_v27  ;;  %p4050_p4 = pnand %p4049_p3, %p4043_p0 }
  0x20   :  { %3993 = vmatmul.mubr.msk.f32.gmra.mrb[10].mxu0 %vm51_vm0, %v26_v28 }
  0x21   :  { %4017 = vmatmul.mubr.msk.f32.gmra.mrb[10].mxu1 %vm51_vm0, %v42_v29  ;;  %3995 = vmatprep.mubr.msk.f32.mxu0 %vm51_vm0, %v27_v30 }
  0x22   :  { %4019 = vmatprep.mubr.msk.f32.mxu1 %vm51_vm0, %v43_v31 }
  0x24   :  { %3996 = vmatmul.mubr.msk.f32.gmra.mrb[12].mxu0 %vm51_vm0, %v28_v32 }
  0x25   :  { %4020 = vmatmul.mubr.msk.f32.gmra.mrb[12].mxu1 %vm51_vm0, %v44_v33  ;;  %3998 = vmatprep.mubr.msk.f32.mxu0 %vm51_vm0, %v29_v34 }
  0x26   :  { %4022 = vmatprep.mubr.msk.f32.mxu1 %vm51_vm0, %v45_v35 }
  0x28   :  { %3999 = vmatmul.mubr.msk.f32.gmra.mrb[14].mxu0 %vm51_vm0, %v30_v36 }
  0x29   :  { %4023 = vmatmul.mubr.msk.f32.gmra.mrb[14].mxu1 %vm51_vm0, %v46_v37 }
  0xdf   :  { %v3979_v39 = vpop.f32.mrb[0].mxu0 }
  0xe0   :  { %v4003_v40 = vpop.f32.mrb[0].mxu1  ;;  %v4235_v41 = vsub.f32 %v4232_v38, %v3979_v39  ;;  %v214_v42 = vpop.f32.mrb[1].mxu0 }
  0xe1   :  { %v294_v43 = vpop.f32.mrb[1].mxu1  ;;  %v4241_v45 = vsub.f32 %v4232_v38, %v4003_v40  ;;  %v4254_v54 = vsub.f32 %v4232_v38, %v214_v42  ;;  %v5774_v40 = vlaneseq }
  0xe2   :  { %v4238_v44 = vsub.f32 %v4232_v38, %v294_v43  ;;  %414 = vmin.xlane.f32.xlu0 %v4235_v41 }
  0xe3   :  { %v3982_v46 = vpop.f32.mrb[2].mxu0  ;;  %v4363_v42 = vand.u32 127, %v5774_v40 }
  0xe4   :  { %444 = vmin.xlane.f32.xlu1 %v4238_v44  ;;  %v4006_v47 = vpop.f32.mrb[2].mxu1  ;;  %v4246_v48 = vsub.f32 %v4232_v38, %v3982_v46  ;;  %v224_v49 = vpop.f32.mrb[3].mxu0 }
  0xe5   :  { %v304_v50 = vpop.f32.mrb[3].mxu1  ;;  %v4251_v51 = vsub.f32 %v4232_v38, %v224_v49  ;;  %v4258_v57 = vsub.f32 %v4232_v38, %v4006_v47  ;;  %5789 = vst [vmem:[#allocation5_spill] sm:$0xff] %v4363_v42 }
  0xe6   :  { %446 = vmin.xlane.f32.xlu0 %v4241_v45  ;;  %v4262_v58 = vsub.f32 %v4232_v38, %v304_v50 }
  0xe7   :  { %v3985_v52 = vpop.f32.mrb[4].mxu0 }
  0xe8   :  { %418 = vmin.xlane.f32.xlu1 %v4246_v48  ;;  %v4009_v53 = vpop.f32.mrb[4].mxu1  ;;  %v234_v55 = vpop.f32.mrb[5].mxu0  ;;  %v4266_v63 = vsub.f32 %v4232_v38, %v3985_v52 }
  0xe9   :  { %v314_v56 = vpop.f32.mrb[5].mxu1  ;;  %v4270_v0 = vsub.f32 %v4232_v38, %v4009_v53  ;;  %v4274_v5 = vsub.f32 %v4232_v38, %v234_v55 }
  0xea   :  { %412 = vmin.xlane.f32.xlu0 %v4254_v54  ;;  %v4278_v6 = vsub.f32 %v4232_v38, %v314_v56 }
  0xeb   :  { %v3988_v59 = vpop.f32.mrb[6].mxu0 }
  0xec   :  { %416 = vmin.xlane.f32.xlu1 %v4251_v51  ;;  %v4012_v60 = vpop.f32.mrb[6].mxu1  ;;  %v244_v61 = vpop.f32.mrb[7].mxu0  ;;  %v4282_v11 = vsub.f32 %v4232_v38, %v3988_v59 }
  0xed   :  { %v324_v62 = vpop.f32.mrb[7].mxu1  ;;  %v4286_v12 = vsub.f32 %v4232_v38, %v4012_v60  ;;  %v4290_v17 = vsub.f32 %v4232_v38, %v244_v61 }
  0xee   :  { %450 = vmin.xlane.f32.xlu0 %v4258_v57  ;;  %v4294_v18 = vsub.f32 %v4232_v38, %v324_v62 }
  0xef   :  { %v3991_v1 = vpop.f32.mrb[8].mxu0 }
  0xf0   :  { %448 = vmin.xlane.f32.xlu1 %v4262_v58  ;;  %v4015_v2 = vpop.f32.mrb[8].mxu1  ;;  %v254_v3 = vpop.f32.mrb[9].mxu0  ;;  %v4298_v23 = vsub.f32 %v4232_v38, %v3991_v1 }
  0xf1   :  { %v334_v4 = vpop.f32.mrb[9].mxu1  ;;  %v4302_v24 = vsub.f32 %v4232_v38, %v4015_v2  ;;  %v4306_v25 = vsub.f32 %v4232_v38, %v254_v3 }
  0xf2   :  { %422 = vmin.xlane.f32.xlu0 %v4266_v63  ;;  %v4310_v26 = vsub.f32 %v4232_v38, %v334_v4 }
  0xf3   :  { %v3994_v7 = vpop.f32.mrb[10].mxu0 }
  0xf4   :  { %454 = vmin.xlane.f32.xlu1 %v4270_v0  ;;  %v4018_v8 = vpop.f32.mrb[10].mxu1  ;;  %v264_v9 = vpop.f32.mrb[11].mxu0  ;;  %v4314_v27 = vsub.f32 %v4232_v38, %v3994_v7 }
  0xf5   :  { %v344_v10 = vpop.f32.mrb[11].mxu1  ;;  %v4318_v28 = vsub.f32 %v4232_v38, %v4018_v8  ;;  %v4322_v29 = vsub.f32 %v4232_v38, %v264_v9 }
  0xf6   :  { %420 = vmin.xlane.f32.xlu0 %v4274_v5  ;;  %v4326_v30 = vsub.f32 %v4232_v38, %v344_v10 }
  0xf7   :  { %v3997_v13 = vpop.f32.mrb[12].mxu0 }
  0xf8   :  { %452 = vmin.xlane.f32.xlu1 %v4278_v6  ;;  %v4021_v14 = vpop.f32.mrb[12].mxu1  ;;  %v274_v15 = vpop.f32.mrb[13].mxu0  ;;  %v4330_v31 = vsub.f32 %v4232_v38, %v3997_v13 }
  0xf9   :  { %v354_v16 = vpop.f32.mrb[13].mxu1  ;;  %v4334_v32 = vsub.f32 %v4232_v38, %v4021_v14  ;;  %v4338_v33 = vsub.f32 %v4232_v38, %v274_v15 }
  0xfa   :  { %426 = vmin.xlane.f32.xlu0 %v4282_v11  ;;  %v4342_v34 = vsub.f32 %v4232_v38, %v354_v16 }
  0xfb   :  { %v4000_v19 = vpop.f32.mrb[14].mxu0 }
  0xfc   :  { %458 = vmin.xlane.f32.xlu1 %v4286_v12  ;;  %v4024_v20 = vpop.f32.mrb[14].mxu1  ;;  %v284_v21 = vpop.f32.mrb[15].mxu0  ;;  %v4353_v37 = vsub.f32 %v4232_v38, %v4000_v19 }
  0xfd   :  { %v364_v22 = vpop.f32.mrb[15].mxu1  ;;  %v4346_v35 = vsub.f32 %v4232_v38, %v284_v21  ;;  %v4357_v39 = vsub.f32 %v4232_v38, %v4024_v20 }
  0xfe   :  { %424 = vmin.xlane.f32.xlu0 %v4290_v17  ;;  %v4350_v36 = vsub.f32 %v4232_v38, %v364_v22 }
 0x100   :  { %456 = vmin.xlane.f32.xlu1 %v4294_v18 }
 0x102   :  { %430 = vmin.xlane.f32.xlu0 %v4298_v23 }
 0x104   :  { %462 = vmin.xlane.f32.xlu1 %v4302_v24 }
 0x106   :  { %428 = vmin.xlane.f32.xlu0 %v4306_v25 }
 0x108   :  { %460 = vmin.xlane.f32.xlu1 %v4310_v26 }
 0x10a   :  { %434 = vmin.xlane.f32.xlu0 %v4314_v27 }
 0x10c   :  { %466 = vmin.xlane.f32.xlu1 %v4318_v28 }
 0x10e   :  { %432 = vmin.xlane.f32.xlu0 %v4322_v29 }
 0x110   :  { %464 = vmin.xlane.f32.xlu1 %v4326_v30 }
 0x112   :  { %438 = vmin.xlane.f32.xlu0 %v4330_v31 }
 0x114   :  { %470 = vmin.xlane.f32.xlu1 %v4334_v32 }
 0x116   :  { %436 = vmin.xlane.f32.xlu0 %v4338_v33 }
 0x118   :  { %468 = vmin.xlane.f32.xlu1 %v4342_v34 }
 0x11a   :  { %440 = vmin.xlane.f32.xlu0 %v4346_v35 }
 0x11c   :  { %472 = vmin.xlane.f32.xlu1 %v4350_v36 }
 0x11e   :  { %442 = vmin.xlane.f32.xlu0 %v4353_v37 }
 0x120   :  { %474 = vmin.xlane.f32.xlu1 %v4357_v39 }
 0x16f   :  { %v415_v43 = vpop.xlane.xlu0 %414 }
 0x170   :  { %vm479_vm1 = vcmp.eq.f32.partialorder %v4235_v41, %v415_v43 }
 0x171   :  { %v445_v46 = vpop.xlane.xlu1 %444  ;;  %v4367_v47 = vsel %vm479_vm1, %v4363_v42, 128 }
 0x172   :  { %v557_v38 = vshra.s32 %v4367_v47, 16  ;;  %vm494_vm3 = vcmp.eq.f32.partialorder %v4238_v44, %v445_v46 }
 0x173   :  { %v447_v49 = vpop.xlane.xlu0 %446 }
 0x174   :  { %vm495_vm2 = vcmp.eq.f32.partialorder %v4241_v45, %v447_v49  ;;  %v4371_v52 = vcvt.s32.f32 %v557_v38  ;;  %v4383_v45 = vsel %vm494_vm3, %v4363_v42, 128 }
 0x175   :  { %v419_v50 = vpop.xlane.xlu1 %418  ;;  %v4374_v53 = vsel %vm495_vm2, %v4363_v42, 128  ;;  %v767_v1 = vshra.s32 %v4383_v45, 16 }
 0x176   :  { %560 = vmin.xlane.f32.xlu0 %v4371_v52  ;;  %v781_v41 = vshra.s32 %v4374_v53, 16  ;;  %vm481_vm5 = vcmp.eq.f32.partialorder %v4246_v48, %v419_v50 }
 0x177   :  { %v413_v55 = vpop.xlane.xlu0 %412  ;;  %v4396_v2 = vsel %vm481_vm5, %v4363_v42, 128  ;;  %v4406_v8 = vcvt.s32.f32 %v767_v1 }
 0x178   :  { %vm478_vm4 = vcmp.eq.f32.partialorder %v4254_v54, %v413_v55  ;;  %v4380_v59 = vcvt.s32.f32 %v781_v41  ;;  %v585_v9 = vshra.s32 %v4396_v2, 16 }
 0x179   :  { %v417_v56 = vpop.xlane.xlu1 %416  ;;  %v4386_v60 = vsel %vm478_vm4, %v4363_v42, 128 }
 0x17a   :  { %784 = vmin.xlane.f32.xlu1 %v4380_v59  ;;  %v543_v44 = vshra.s32 %v4386_v60, 16  ;;  %vm480_vm7 = vcmp.eq.f32.partialorder %v4251_v51, %v417_v56  ;;  %v4420_v16 = vcvt.s32.f32 %v585_v9 }
 0x17b   :  { %v451_v61 = vpop.xlane.xlu0 %450  ;;  %v4410_v10 = vsel %vm480_vm7, %v4363_v42, 128 }
 0x17c   :  { %vm497_vm6 = vcmp.eq.f32.partialorder %v4258_v57, %v451_v61  ;;  %v4392_v54 = vcvt.s32.f32 %v543_v44  ;;  %v571_v19 = vshra.s32 %v4410_v10, 16 }
 0x17d   :  { %v449_v62 = vpop.xlane.xlu1 %448  ;;  %v4399_v3 = vsel %vm497_vm6, %v4363_v42, 128 }
 0x17e   :  { %546 = vmin.xlane.f32.xlu0 %v4392_v54  ;;  %v809_v48 = vshra.s32 %v4399_v3, 16  ;;  %vm496_vm9 = vcmp.eq.f32.partialorder %v4262_v58, %v449_v62  ;;  %v4431_v22 = vcvt.s32.f32 %v571_v19 }
 0x17f   :  { %v423_v4 = vpop.xlane.xlu0 %422  ;;  %v4424_v20 = vsel %vm496_vm9, %v4363_v42, 128 }
 0x180   :  { %v4404_v57 = vcvt.s32.f32 %v809_v48  ;;  %vm483_vm10 = vcmp.eq.f32.partialorder %v4266_v63, %v423_v4  ;;  %v795_v43 = vshra.s32 %v4424_v20, 16 }
 0x181   :  { %v455_v7 = vpop.xlane.xlu1 %454  ;;  %v4435_v46 = vsel %vm483_vm10, %v4363_v42, 128 }
 0x182   :  { %vm499_vm8 = vcmp.eq.f32.partialorder %v4270_v0, %v455_v7  ;;  %812 = vmin.xlane.f32.xlu1 %v4404_v57  ;;  %770 = vmin.xlane.f32.xlu0 %v4406_v8  ;;  %v4444_v41 = vcvt.s32.f32 %v795_v43  ;;  %v613_v55 = vshra.s32 %v4435_v46, 16 }
 0x183   :  { %v4415_v51 = vsel %vm499_vm8, %v4363_v42, 128  ;;  %v421_v13 = vpop.xlane.xlu0 %420 }
 0x184   :  { %v837_v14 = vshra.s32 %v4415_v51, 16  ;;  %vm482_vm12 = vcmp.eq.f32.partialorder %v4274_v5, %v421_v13  ;;  %v4460_v1 = vcvt.s32.f32 %v613_v55 }
 0x185   :  { %v453_v15 = vpop.xlane.xlu1 %452  ;;  %v4448_v56 = vsel %vm482_vm12, %v4363_v42, 128 }
 0x186   :  { %v4426_v0 = vcvt.s32.f32 %v837_v14  ;;  %588 = vmin.xlane.f32.xlu0 %v4420_v16  ;;  %vm498_vm14 = vcmp.eq.f32.partialorder %v4278_v6, %v453_v15  ;;  %v599_v48 = vshra.s32 %v4448_v56, 16 }
 0x187   :  { %v427_v58 = vpop.xlane.xlu0 %426 }
 0x188   :  { %840 = vmin.xlane.f32.xlu1 %v4426_v0  ;;  %vm485_vm0 = vcmp.eq.f32.partialorder %v4282_v11, %v427_v58  ;;  %v4476_v14 = vcvt.s32.f32 %v599_v48 }
 0x189   :  { %v459_v21 = vpop.xlane.xlu1 %458 }
 0x18a   :  { %vm501_vm11 = vcmp.eq.f32.partialorder %v4286_v12, %v459_v21  ;;  %574 = vmin.xlane.f32.xlu0 %v4431_v22 }
 0x18b   :  { %v4440_v38 = vsel %vm501_vm11, %v4363_v42, 128  ;;  %v425_v63 = vpop.xlane.xlu0 %424 }
 0x18c   :  { %v865_v49 = vshra.s32 %v4440_v38, 16  ;;  %vm484_vm2 = vcmp.eq.f32.partialorder %v4290_v17, %v425_v63 }
 0x18d   :  { %v457_v50 = vpop.xlane.xlu1 %456 }
 0x18e   :  { %vm500_vm13 = vcmp.eq.f32.partialorder %v4294_v18, %v457_v50  ;;  %v4451_v12 = vcvt.s32.f32 %v865_v49  ;;  %798 = vmin.xlane.f32.xlu0 %v4444_v41  ;;  %v4464_v18 = vsel %vm498_vm14, %v4363_v42, 128 }
 0x18f   :  { %v4455_v5 = vsel %vm500_vm13, %v4363_v42, 128  ;;  %v431_v44 = vpop.xlane.xlu0 %430  ;;  %v823_v15 = vshra.s32 %v4464_v18, 16 }
 0x190   :  { %868 = vmin.xlane.f32.xlu1 %v4451_v12  ;;  %v851_v61 = vshra.s32 %v4455_v5, 16  ;;  %vm487_vm4 = vcmp.eq.f32.partialorder %v4298_v23, %v431_v44 }
 0x191   :  { %v463_v62 = vpop.xlane.xlu1 %462  ;;  %v4492_v49 = vcvt.s32.f32 %v823_v15 }
 0x192   :  { %vm503_vm15 = vcmp.eq.f32.partialorder %v4302_v24, %v463_v62  ;;  %v4467_v6 = vcvt.s32.f32 %v851_v61  ;;  %616 = vmin.xlane.f32.xlu0 %v4460_v1  ;;  %v4480_v24 = vsel %vm485_vm0, %v4363_v42, 128 }
 0x193   :  { %v4471_v4 = vsel %vm503_vm15, %v4363_v42, 128  ;;  %v429_v7 = vpop.xlane.xlu0 %428  ;;  %v641_v50 = vshra.s32 %v4480_v24, 16 }
 0x194   :  { %854 = vmin.xlane.f32.xlu1 %v4467_v6  ;;  %v893_v9 = vshra.s32 %v4471_v4, 16  ;;  %vm486_vm6 = vcmp.eq.f32.partialorder %v4306_v25, %v429_v7 }
 0x195   :  { %v461_v13 = vpop.xlane.xlu1 %460  ;;  %v4508_v48 = vcvt.s32.f32 %v641_v50 }
 0x196   :  { %vm502_vm1 = vcmp.eq.f32.partialorder %v4310_v26, %v461_v13  ;;  %v4483_v11 = vcvt.s32.f32 %v893_v9  ;;  %602 = vmin.xlane.f32.xlu0 %v4476_v14  ;;  %v4496_v26 = vsel %vm484_vm2, %v4363_v42, 128 }
 0x197   :  { %v4487_v19 = vsel %vm502_vm1, %v4363_v42, 128  ;;  %v435_v58 = vpop.xlane.xlu0 %434  ;;  %v627_v9 = vshra.s32 %v4496_v26, 16 }
 0x198   :  { %896 = vmin.xlane.f32.xlu1 %v4483_v11  ;;  %v879_v21 = vshra.s32 %v4487_v19, 16  ;;  %vm489_vm8 = vcmp.eq.f32.partialorder %v4314_v27, %v435_v58 }
 0x199   :  { %v467_v43 = vpop.xlane.xlu1 %466 }
 0x19a   :  { %vm505_vm3 = vcmp.eq.f32.partialorder %v4318_v28, %v467_v43  ;;  %v4499_v17 = vcvt.s32.f32 %v879_v21  ;;  %826 = vmin.xlane.f32.xlu0 %v4492_v49  ;;  %v4512_v28 = vsel %vm487_vm4, %v4363_v42, 128  ;;  %v4524_v21 = vcvt.s32.f32 %v627_v9 }
 0x19b   :  { %v4503_v63 = vsel %vm505_vm3, %v4363_v42, 128  ;;  %v433_v55 = vpop.xlane.xlu0 %432  ;;  %v669_v43 = vshra.s32 %v4512_v28, 16 }
 0x19c   :  { %882 = vmin.xlane.f32.xlu1 %v4499_v17  ;;  %v921_v61 = vshra.s32 %v4503_v63, 16  ;;  %vm488_vm10 = vcmp.eq.f32.partialorder %v4322_v29, %v433_v55 }
 0x19d   :  { %v465_v62 = vpop.xlane.xlu1 %464  ;;  %v4540_v9 = vcvt.s32.f32 %v669_v43 }
 0x19e   :  { %vm504_vm5 = vcmp.eq.f32.partialorder %v4326_v30, %v465_v62  ;;  %v4515_v23 = vcvt.s32.f32 %v921_v61  ;;  %644 = vmin.xlane.f32.xlu0 %v4508_v48  ;;  %v4528_v30 = vsel %vm486_vm6, %v4363_v42, 128 }
 0x19f   :  { %v4519_v44 = vsel %vm504_vm5, %v4363_v42, 128  ;;  %v439_v50 = vpop.xlane.xlu0 %438  ;;  %v655_v40 = vshra.s32 %v4528_v30, 16 }
 0x1a0   :  { %924 = vmin.xlane.f32.xlu1 %v4515_v23  ;;  %v907_v13 = vshra.s32 %v4519_v44, 16  ;;  %vm491_vm11 = vcmp.eq.f32.partialorder %v4330_v31, %v439_v50 }
 0x1a1   :  { %v471_v15 = vpop.xlane.xlu1 %470 }
 0x1a2   :  { %vm507_vm7 = vcmp.eq.f32.partialorder %v4334_v32, %v471_v15  ;;  %v4531_v25 = vcvt.s32.f32 %v907_v13  ;;  %630 = vmin.xlane.f32.xlu0 %v4524_v21  ;;  %v4544_v32 = vsel %vm489_vm8, %v4363_v42, 128 }
 0x1a3   :  { %v4535_v7 = vsel %vm507_vm7, %v4363_v42, 128  ;;  %v437_v13 = vpop.xlane.xlu0 %436 }
 0x1a4   :  { %5790 = vst [vmem:[#allocation6_spill] sm:$0xff] %v4531_v25  ;;  %5791 = vst [vmem:[#allocation7_spill] sm:$0xff] %v4535_v7  ;;  %910 = vmin.xlane.f32.xlu1 %v4531_v25  ;;  %v949_v61 = vshra.s32 %v4535_v7, 16  ;;  %v4556_v7 = vcvt.s32.f32 %v655_v40  ;;  %v697_v25 = vshra.s32 %v4544_v32, 16  ;;  %vm490_vm14 = vcmp.eq.f32.partialorder %v4338_v33, %v437_v13 }
 0x1a5   :  { %v469_v62 = vpop.xlane.xlu1 %468 }
 0x1a6   :  { %vm506_vm9 = vcmp.eq.f32.partialorder %v4342_v34, %v469_v62  ;;  %v4547_v27 = vcvt.s32.f32 %v949_v61  ;;  %672 = vmin.xlane.f32.xlu0 %v4540_v9  ;;  %v4560_v34 = vsel %vm488_vm10, %v4363_v42, 128  ;;  %v4568_v55 = vcvt.s32.f32 %v697_v25 }
 0x1a7   :  { %v4551_v58 = vsel %vm506_vm9, %v4363_v42, 128  ;;  %v683_v40 = vshra.s32 %v4560_v34, 16  ;;  %v4572_v62 = vsel %vm491_vm11, %v4363_v42, 128 }
 0x1a8   :  { %5792 = vst [vmem:[#allocation8_spill] sm:$0xff] %v4551_v58  ;;  %952 = vmin.xlane.f32.xlu1 %v4547_v27  ;;  %v935_v15 = vshra.s32 %v4551_v58, 16  ;;  %v441_v58 = vpop.xlane.xlu0 %440 }
 0x1a9   :  { %v473_v43 = vpop.xlane.xlu1 %472  ;;  %v4584_v25 = vcvt.s32.f32 %v683_v40  ;;  %vm492_vm15 = vcmp.eq.f32.partialorder %v4346_v35, %v441_v58 }
 0x1aa   :  { %v4562_v61 = vcvt.s32.f32 %v935_v15  ;;  %658 = vmin.xlane.f32.xlu0 %v4556_v7  ;;  %vm508_vm12 = vcmp.eq.f32.partialorder %v4350_v36, %v473_v43  ;;  %v725_v15 = vshra.s32 %v4572_v62, 16  ;;  %v4588_v43 = vsel %vm490_vm14, %v4363_v42, 128 }
 0x1ab   :  { %v4577_v31 = vsel %vm508_vm12, %v4363_v42, 128  ;;  %v711_v40 = vshra.s32 %v4588_v43, 16 }
 0x1ac   :  { %5793 = vst [vmem:[#allocation9_spill] sm:$0xff] %v4562_v61  ;;  %938 = vmin.xlane.f32.xlu1 %v4562_v61  ;;  %5794 = vst [vmem:[#allocation10_spill] sm:$0xff] %v4577_v31  ;;  %v963_v33 = vshra.s32 %v4577_v31, 16  ;;  %v443_v13 = vpop.xlane.xlu0 %442 }
 0x1ad   :  { %v475_v29 = vpop.xlane.xlu1 %474  ;;  %vm493_vm0 = vcmp.eq.f32.partialorder %v4353_v37, %v443_v13  ;;  %v4607_v35 = vcvt.s32.f32 %v711_v40  ;;  %v556_v13 = vand.u32 65535, %v4367_v47 }
 0x1ae   :  { %vm509_vm13 = vcmp.eq.f32.partialorder %v4357_v39, %v475_v29  ;;  %700 = vmin.xlane.f32.xlu0 %v4568_v55  ;;  %v4596_v29 = vcvt.s32.f32 %v725_v15  ;;  %v4602_v61 = vcvt.s32.f32 %v963_v33 }
 0x1af   :  { %v4580_v36 = vsel %vm509_vm13, %v4363_v42, 128 }
 0x1b0   :  { %5795 = vst [vmem:[#allocation11_spill] sm:$0xff] %v4580_v36  ;;  %v977_v50 = vshra.s32 %v4580_v36, 16  ;;  %v4600_v36 = vsel %vm492_vm15, %v4363_v42, 128  ;;  %5797 = vst [vmem:[#allocation13_spill] sm:$0xff] %v4602_v61 }
 0x1b1   :  { %v739_v58 = vshra.s32 %v4600_v36, 16 }
 0x1b2   :  { %v4590_v39 = vcvt.s32.f32 %v977_v50  ;;  %686 = vmin.xlane.f32.xlu0 %v4584_v25  ;;  %v4611_v50 = vsel %vm493_vm0, %v4363_v42, 128  ;;  %v780_v42 = vand.u32 65535, %v4374_v53  ;;  %v766_v53 = vand.u32 65535, %v4383_v45 }
 0x1b3   :  { %v4614_v15 = vcvt.s32.f32 %v739_v58  ;;  %v753_v33 = vshra.s32 %v4611_v50, 16 }
 0x1b4   :  { %5796 = vst [vmem:[#allocation12_spill] sm:$0xff] %v4590_v39  ;;  %980 = vmin.xlane.f32.xlu1 %v4590_v39  ;;  %v558_v39 = vcvt.s32.f32 %v556_v13  ;;  %v782_v31 = vcvt.s32.f32 %v780_v42  ;;  %v768_v42 = vcvt.s32.f32 %v766_v53 }
 0x1b5   :  { %v4618_v37 = vcvt.s32.f32 %v753_v33  ;;  %v542_v33 = vand.u32 65535, %v4386_v60  ;;  %v584_v60 = vand.u32 65535, %v4396_v2 }
 0x1b6   :  { %728 = vmin.xlane.f32.xlu0 %v4596_v29 }
 0x1b7   :  { %5798 = vst [vmem:[#allocation14_spill] sm:$0xff] %v4618_v37  ;;  %v544_v13 = vcvt.s32.f32 %v542_v33  ;;  %v586_v45 = vcvt.s32.f32 %v584_v60  ;;  %v570_v33 = vand.u32 65535, %v4410_v10 }
 0x1b8   :  { %966 = vmin.xlane.f32.xlu1 %v4602_v61 }
 0x1ba   :  { %714 = vmin.xlane.f32.xlu0 %v4607_v35 }
 0x1be   :  { %742 = vmin.xlane.f32.xlu0 %v4614_v15 }
 0x1c2   :  { %756 = vmin.xlane.f32.xlu0 %v4618_v37 }
 0x203   :  { %v4622_v40 = vpop.xlane.xlu0 %560 }
 0x204   :  { %vm562_vm1 = vcmp.eq.f32.partialorder %v4371_v52, %v4622_v40 }
 0x205   :  { %v563_v58 = vsel %vm562_vm1, %v558_v39, inf }
 0x206   :  { %564 = vmin.xlane.f32.xlu1 %v563_v58  ;;  %v808_v58 = vand.u32 65535, %v4399_v3 }
 0x207   :  { %v4627_v61 = vpop.xlane.xlu1 %784 }
 0x208   :  { %vm786_vm2 = vcmp.eq.f32.partialorder %v4380_v59, %v4627_v61 }
 0x209   :  { %v787_v37 = vsel %vm786_vm2, %v782_v31, inf }
 0x20a   :  { %788 = vmin.xlane.f32.xlu1 %v787_v37 }
 0x20b   :  { %v4632_v47 = vpop.xlane.xlu0 %546 }
 0x20c   :  { %vm548_vm3 = vcmp.eq.f32.partialorder %v4392_v54, %v4632_v47 }
 0x20d   :  { %v549_v52 = vsel %vm548_vm3, %v544_v13, inf  ;;  %v794_v13 = vand.u32 65535, %v4424_v20 }
 0x20e   :  { %550 = vmin.xlane.f32.xlu1 %v549_v52 }
 0x20f   :  { %v4637_v39 = vpop.xlane.xlu0 %770  ;;  %v4642_v31 = vpop.xlane.xlu1 %812 }
 0x210   :  { %vm772_vm4 = vcmp.eq.f32.partialorder %v4406_v8, %v4637_v39  ;;  %vm814_vm6 = vcmp.eq.f32.partialorder %v4404_v57, %v4642_v31  ;;  %v810_v8 = vcvt.s32.f32 %v808_v58  ;;  %v612_v57 = vand.u32 65535, %v4435_v46 }
 0x211   :  { %v773_v59 = vsel %vm772_vm4, %v768_v42, inf  ;;  %v796_v42 = vcvt.s32.f32 %v794_v13  ;;  %v4066_v13 = vmov 0  }
 0x212   :  { %774 = vmin.xlane.f32.xlu0 %v773_v59  ;;  %v815_v52 = vsel %vm814_vm6, %v810_v8, inf  ;;  %v598_v8 = vand.u32 65535, %v4448_v56  ;;  %4040 = vset.pattern.permute.xlu1 %v4066_v13 }
 0x213   :  { %v4644_v37 = vpop.xlane.xlu0 %588  ;;  %4041 = vset.pattern.permute.xlu0 %v4066_v13 }
 0x214   :  { %vm590_vm5 = vcmp.eq.f32.partialorder %v4420_v16, %v4644_v37  ;;  %v572_v16 = vcvt.s32.f32 %v570_v33  ;;  %v822_v33 = vand.u32 65535, %v4464_v18 }
 0x215   :  { %v591_v54 = vsel %vm590_vm5, %v586_v45, inf  ;;  %v4655_v53 = vpop.xlane.xlu1 %840  ;;  %v614_v45 = vcvt.s32.f32 %v612_v57 }
 0x216   :  { %592 = vmin.xlane.f32.xlu1 %v591_v54  ;;  %vm842_vm10 = vcmp.eq.f32.partialorder %v4426_v0, %v4655_v53  ;;  %v600_v0 = vcvt.s32.f32 %v598_v8 }
 0x217   :  { %v4651_v2 = vpop.xlane.xlu0 %574 }
 0x218   :  { %vm576_vm7 = vcmp.eq.f32.partialorder %v4431_v22, %v4651_v2  ;;  %v836_v22 = vand.u32 65535, %v4415_v51 }
 0x219   :  { %v577_v10 = vsel %vm576_vm7, %v572_v16, inf  ;;  %v824_v16 = vcvt.s32.f32 %v822_v33 }
 0x21a   :  { %816 = vmin.xlane.f32.xlu1 %v815_v52  ;;  %v838_v54 = vcvt.s32.f32 %v836_v22 }
 0x21b   :  { %v4659_v3 = vpop.xlane.xlu0 %798 }
 0x21c   :  { %vm800_vm8 = vcmp.eq.f32.partialorder %v4444_v41, %v4659_v3  ;;  %v843_v51 = vsel %vm842_vm10, %v838_v54, inf  ;;  %v850_v54 = vand.u32 65535, %v4455_v5  ;;  %v892_v5 = vand.u32 65535, %v4471_v4 }
 0x21d   :  { %v4662_v60 = vpop.xlane.xlu1 %868  ;;  %v801_v20 = vsel %vm800_vm8, %v796_v42, inf  ;;  %v640_v42 = vand.u32 65535, %v4480_v24  ;;  %v696_v4 = vand.u32 65535, %v4544_v32  ;;  %v682_v32 = vand.u32 65535, %v4560_v34 }
 0x21e   :  { %578 = vmin.xlane.f32.xlu1 %v577_v10  ;;  %802 = vmin.xlane.f32.xlu0 %v801_v20  ;;  %v626_v20 = vand.u32 65535, %v4496_v26  ;;  %vm870_vm14 = vcmp.eq.f32.partialorder %v4451_v12, %v4662_v60  ;;  %v852_v33 = vcvt.s32.f32 %v850_v54  ;;  %v906_v34 = vand.u32 65535, %v4519_v44  ;;  %v5799_v54 = vld [vmem:[#allocation6_spill] sm:$0xff] }
 0x21f   :  { %v4666_v59 = vpop.xlane.xlu0 %616  ;;  %v642_v10 = vcvt.s32.f32 %v640_v42  ;;  %v878_v42 = vand.u32 65535, %v4487_v19  ;;  %v920_v19 = vand.u32 65535, %v4503_v63  ;;  %v684_v63 = vcvt.s32.f32 %v682_v32 }
 0x220   :  { %vm618_vm9 = vcmp.eq.f32.partialorder %v4460_v1, %v4666_v59 }
 0x221   :  { %v4671_v58 = vpop.xlane.xlu1 %854  ;;  %v619_v46 = vsel %vm618_vm9, %v614_v45, inf }
 0x222   :  { %620 = vmin.xlane.f32.xlu1 %v619_v46  ;;  %v628_v46 = vcvt.s32.f32 %v626_v20  ;;  %vm856_vm0 = vcmp.eq.f32.partialorder %v4467_v6, %v4671_v58 }
 0x223   :  { %v4675_v41 = vpop.xlane.xlu0 %602 }
 0x224   :  { %vm604_vm11 = vcmp.eq.f32.partialorder %v4476_v14, %v4675_v41  ;;  %v864_v14 = vand.u32 65535, %v4440_v38  ;;  %v668_v38 = vand.u32 65535, %v4512_v28  ;;  %v654_v28 = vand.u32 65535, %v4528_v30 }
 0x225   :  { %v4681_v1 = vpop.xlane.xlu1 %896  ;;  %v605_v56 = vsel %vm604_vm11, %v600_v0, inf  ;;  %v894_v0 = vcvt.s32.f32 %v892_v5 }
 0x226   :  { %844 = vmin.xlane.f32.xlu1 %v843_v51  ;;  %v866_v22 = vcvt.s32.f32 %v864_v14  ;;  %v670_v13 = vcvt.s32.f32 %v668_v38  ;;  %vm898_vm2 = vcmp.eq.f32.partialorder %v4483_v11, %v4681_v1  ;;  %v908_v38 = vcvt.s32.f32 %v906_v34  ;;  %v5806_v34 = vld [vmem:[#allocation13_spill] sm:$0xff] }
 0x227   :  { %v4683_v52 = vpop.xlane.xlu0 %826 }
 0x228   :  { %vm828_vm12 = vcmp.eq.f32.partialorder %v4492_v49, %v4683_v52  ;;  %v871_v26 = vsel %vm870_vm14, %v866_v22, inf  ;;  %v922_v22 = vcvt.s32.f32 %v920_v19 }
 0x229   :  { %v829_v18 = vsel %vm828_vm12, %v824_v16, inf  ;;  %v4694_v45 = vpop.xlane.xlu1 %882  ;;  %v656_v16 = vcvt.s32.f32 %v654_v28 }
 0x22a   :  { %606 = vmin.xlane.f32.xlu1 %v605_v56  ;;  %830 = vmin.xlane.f32.xlu0 %v829_v18  ;;  %vm884_vm4 = vcmp.eq.f32.partialorder %v4499_v17, %v4694_v45  ;;  %v880_v18 = vcvt.s32.f32 %v878_v42  ;;  %v724_v17 = vand.u32 65535, %v4572_v62  ;;  %v5802_v42 = vld [vmem:[#allocation9_spill] sm:$0xff] }
 0x22b   :  { %v4688_v57 = vpop.xlane.xlu0 %644 }
 0x22c   :  { %vm646_vm13 = vcmp.eq.f32.partialorder %v4508_v48, %v4688_v57 }
 0x22d   :  { %v647_v24 = vsel %vm646_vm13, %v642_v10, inf  ;;  %v4706_v8 = vpop.xlane.xlu1 %924  ;;  %v698_v10 = vcvt.s32.f32 %v696_v4  ;;  %v752_v4 = vand.u32 65535, %v4611_v50  ;;  %v5805_v50 = vld [vmem:[#allocation14_spill] sm:$0xff] }
 0x22e   :  { %648 = vmin.xlane.f32.xlu1 %v647_v24  ;;  %vm926_vm6 = vcmp.eq.f32.partialorder %v4515_v23, %v4706_v8  ;;  %v710_v23 = vand.u32 65535, %v4588_v43 }
 0x22f   :  { %v4698_v49 = vpop.xlane.xlu0 %630  ;;  %v754_v32 = vcvt.s32.f32 %v752_v4 }
 0x230   :  { %vm632_vm15 = vcmp.eq.f32.partialorder %v4524_v21, %v4698_v49  ;;  %v857_v21 = vsel %vm856_vm0, %v852_v33, inf  ;;  %v712_v28 = vcvt.s32.f32 %v710_v23 }
 0x231   :  { %v633_v48 = vsel %vm632_vm15, %v628_v46, inf  ;;  %v4722_v30 = vpop.xlane.xlu1 %910 }
 0x232   :  { %872 = vmin.xlane.f32.xlu1 %v871_v26  ;;  %634 = vmin.xlane.f32.xlu0 %v633_v48  ;;  %vm912_vm8 = vcmp.eq.f32.partialorder %v5799_v54, %v4722_v30  ;;  %v726_v26 = vcvt.s32.f32 %v724_v17  ;;  %v5800_v48 = vld [vmem:[#allocation7_spill] sm:$0xff] }
 0x233   :  { %v4708_v12 = vpop.xlane.xlu0 %672  ;;  %v948_v33 = vand.u32 65535, %v5800_v48  ;;  %v5804_v17 = vld [vmem:[#allocation11_spill] sm:$0xff]  ;;  %v553_v48 = vcvt.f32.s32 %v4632_v47 }
 0x234   :  { %vm674_vm1 = vcmp.eq.f32.partialorder %v4540_v9, %v4708_v12  ;;  %v899_v9 = vsel %vm898_vm2, %v894_v0, inf  ;;  %vm3694_vm2 = vcmask 195712  }
 0x235   :  { %v675_v51 = vsel %vm674_vm1, %v670_v13, inf  ;;  %v4735_v20 = vpop.xlane.xlu1 %952  ;;  %v950_v43 = vcvt.s32.f32 %v948_v33  ;;  %v819_v33 = vcvt.f32.s32 %v4642_v31  ;;  %vm3687_vm1 = vcmask 130112  }
 0x236   :  { %858 = vmin.xlane.f32.xlu0 %v857_v21  ;;  %676 = vmin.xlane.f32.xlu1 %v675_v51  ;;  %vm954_vm10 = vcmp.eq.f32.partialorder %v4547_v27, %v4735_v20  ;;  %v5801_v21 = vld [vmem:[#allocation8_spill] sm:$0xff]  ;;  %v738_v27 = vand.u32 65535, %v4600_v36  ;;  %v976_v36 = vand.u32 65535, %v5804_v17 }
 0x237   :  { %v4716_v6 = vpop.xlane.xlu0 %658  ;;  %v934_v51 = vand.u32 65535, %v5801_v21  ;;  %v4067_v21 = vmov 1966171168  }
 0x238   :  { %vm660_vm3 = vcmp.eq.f32.partialorder %v4556_v7, %v4716_v6  ;;  %v885_v7 = vsel %vm884_vm4, %v880_v18, inf  ;;  %v740_v19 = vcvt.s32.f32 %v738_v27  ;;  %vm3708_vm4 = vcmask 326912  }
 0x239   :  { %v661_v56 = vsel %vm660_vm3, %v656_v16, inf  ;;  %v4750_v44 = vpop.xlane.xlu1 %938  ;;  %vm3701_vm3 = vcmask 261312  }
 0x23a   :  { %900 = vmin.xlane.f32.xlu1 %v899_v9  ;;  %662 = vmin.xlane.f32.xlu0 %v661_v56  ;;  %vm940_vm12 = vcmp.eq.f32.partialorder %v5802_v42, %v4750_v44  ;;  %v936_v56 = vcvt.s32.f32 %v934_v51  ;;  %v2019_v51 = vunpack.c.l.s4 %v4067_v21 }
 0x23b   :  { %v4726_v11 = vpop.xlane.xlu0 %700 }
 0x23c   :  { %vm702_vm5 = vcmp.eq.f32.partialorder %v4568_v55, %v4726_v11  ;;  %v927_v55 = vsel %vm926_vm6, %v922_v22, inf  ;;  %v941_v18 = vsel %vm940_vm12, %v936_v56, inf  ;;  %v2020_v4 = vunpack.c.0.s8 %v2019_v51 }
 0x23d   :  { %v703_v14 = vsel %vm702_vm5, %v698_v10, inf  ;;  %v875_v56 = vcvt.f32.s32 %v4662_v60  ;;  %vm3715_vm5 = vcmask 392512   ;;  %vm3722_vm6 = vcmask 458112  }
 0x23e   :  { %886 = vmin.xlane.f32.xlu0 %v885_v7  ;;  %704 = vmin.xlane.f32.xlu1 %v703_v14  ;;  %v5803_v7 = vld [vmem:[#allocation10_spill] sm:$0xff]  ;;  %vm3764_vm12 = vcmask 851712  }
 0x23f   :  { %v4737_v24 = vpop.xlane.xlu0 %686  ;;  %v962_v14 = vand.u32 65535, %v5803_v7  ;;  %v609_v7 = vcvt.f32.s32 %v4675_v41 }
 0x240   :  { %vm688_vm7 = vcmp.eq.f32.partialorder %v4584_v25, %v4737_v24  ;;  %v913_v25 = vsel %vm912_vm8, %v908_v38, inf  ;;  %v567_v38 = vcvt.f32.s32 %v4622_v40  ;;  %v4793_v40 = vshll.u32 %v553_v48, 16 }
 0x241   :  { %v689_v46 = vsel %vm688_vm7, %v684_v63, inf  ;;  %v4759_v0 = vpop.xlane.xlu1 %980  ;;  %v679_v48 = vcvt.f32.s32 %v4708_v12  ;;  %vm3729_vm7 = vcmask 523712   ;;  %vm3736_vm8 = vcmask 589312  }
 0x242   :  { %928 = vmin.xlane.f32.xlu1 %v927_v55  ;;  %690 = vmin.xlane.f32.xlu0 %v689_v46  ;;  %v964_v55 = vcvt.s32.f32 %v962_v14  ;;  %v978_v46 = vcvt.s32.f32 %v976_v36  ;;  %v903_v14 = vcvt.f32.s32 %v4681_v1  ;;  %v4841_v1 = vshll.u32 %v875_v56, 16 }
 0x243   :  { %v4745_v62 = vpop.xlane.xlu0 %728  ;;  %v4878_v51 = vshll.u32 %v679_v48, 16 }
 0x244   :  { %vm730_vm9 = vcmp.eq.f32.partialorder %v4596_v29, %v4745_v62  ;;  %v955_v29 = vsel %vm954_vm10, %v950_v43, inf  ;;  %v5808_v43 = vlaneseq  ;;  %v735_v12 = vcvt.f32.s32 %v4745_v62 }
 0x245   :  { %v731_v13 = vsel %vm730_vm9, %v726_v26, inf  ;;  %v791_v26 = vcvt.f32.s32 %v4627_v61  ;;  %v4795_v61 = vshll.u32 %v819_v33, 16  ;;  %v945_v33 = vcvt.f32.s32 %v4750_v44 }
 0x246   :  { %914 = vmin.xlane.f32.xlu0 %v913_v25  ;;  %732 = vmin.xlane.f32.xlu1 %v731_v13  ;;  %v777_v25 = vcvt.f32.s32 %v4637_v39  ;;  %v595_v13 = vcvt.f32.s32 %v4644_v37  ;;  %v581_v39 = vcvt.f32.s32 %v4651_v2  ;;  %v805_v37 = vcvt.f32.s32 %v4659_v3 }
 0x247   :  { %v4754_v5 = vpop.xlane.xlu0 %714  ;;  %v4791_v42 = vshll.u32 %v791_v26, 16  ;;  %v917_v26 = vcvt.f32.s32 %v4722_v30  ;;  %vm3743_vm9 = vcmask 654912   ;;  %vm3750_vm10 = vcmask 720512  }
 0x248   :  { %vm716_vm11 = vcmp.eq.f32.partialorder %v4607_v35, %v4754_v5  ;;  %v4769_v35 = vpop.xlane.xlu1 %966  ;;  %v4797_v47 = vshll.u32 %v777_v25, 16  ;;  %v4799_v31 = vshll.u32 %v595_v13, 16  ;;  %v4833_v41 = vshll.u32 %v805_v37, 16 }
 0x249   :  { %v717_v16 = vsel %vm716_vm11, %v712_v28, inf  ;;  %vm968_vm15 = vcmp.eq.f32.partialorder %v5806_v34, %v4769_v35  ;;  %v4788_v28 = vshrl.u32 %v5808_v43, 7  ;;  %v889_v34 = vcvt.f32.s32 %v4694_v45 }
 0x24a   :  { %956 = vmin.xlane.f32.xlu1 %v955_v29  ;;  %718 = vmin.xlane.f32.xlu0 %v717_v16  ;;  %v969_v54 = vsel %vm968_vm15, %v964_v55, inf  ;;  %v847_v29 = vcvt.f32.s32 %v4655_v53  ;;  %v568_v16 = vshll.u32 %v567_v38, 16  ;;  %v4849_v55 = vshll.u32 %v609_v7, 16 }
 0x24b   :  { %v4765_v9 = vpop.xlane.xlu0 %742  ;;  %5809 = vst [vmem:[#allocation6_spill] sm:$0xff] %v4788_v28  ;;  %v4804_v27 = vsub.s32 0, %v4788_v28  ;;  %v4816_v2 = vsub.s32 2, %v4788_v28  ;;  %v4819_v3 = vsub.s32 3, %v4788_v28  ;;  %v4823_v17 = vsub.s32 4, %v4788_v28 }
 0x24c   :  { %vm744_vm13 = vcmp.eq.f32.partialorder %v4614_v15, %v4765_v9  ;;  %v5807_v15 = vld [vmem:[#allocation12_spill] sm:$0xff]  ;;  %v4806_v53 = vshll.u32 %v847_v29, 16  ;;  %v4826_v60 = vsub.s32 5, %v4788_v28  ;;  %v4836_v36 = vsub.s32 7, %v4788_v28 }
 0x24d   :  { %v745_v22 = vsel %vm744_vm13, %v740_v19, inf  ;;  %vm982_vm0 = vcmp.eq.f32.partialorder %v5807_v15, %v4759_v0  ;;  %v4811_v19 = vsub.s32 1, %v4788_v28  ;;  %v637_v38 = vcvt.f32.s32 %v4698_v49 }
 0x24e   :  { %942 = vmin.xlane.f32.xlu0 %v941_v18  ;;  %v983_v23 = vsel %vm982_vm0, %v978_v46, inf  ;;  %v623_v18 = vcvt.f32.s32 %v4666_v59  ;;  %v4829_v59 = vsub.s32 6, %v4788_v28  ;;  %v651_v46 = vcvt.f32.s32 %v4688_v57 }
 0x24f   :  { %v4771_v10 = vpop.xlane.xlu0 %756  ;;  %v665_v45 = vcvt.f32.s32 %v4716_v6  ;;  %v707_v25 = vcvt.f32.s32 %v4726_v11  ;;  %v4864_v57 = vshll.u32 %v889_v34, 16  ;;  %v987_v49 = vcvt.f32.s32 %v4759_v0 }
 0x250   :  { %vm758_vm14 = vcmp.eq.f32.partialorder %v5805_v50, %v4771_v10  ;;  %v4839_v50 = vsub.s32 %v2020_v4, %v4788_v28  ;;  %v4868_v21 = vshll.u32 %v651_v46, 16  ;;  %v973_v6 = vcvt.f32.s32 %v4769_v35 }
 0x251   :  { %v759_v63 = vsel %vm758_vm14, %v754_v32, inf  ;;  %v861_v32 = vcvt.f32.s32 %v4671_v58  ;;  %v4831_v58 = vshll.u32 %v581_v39, 16  ;;  %v4874_v44 = vshll.u32 %v637_v38, 16 }
 0x252   :  { %746 = vmin.xlane.f32.xlu0 %v745_v22  ;;  %760 = vmin.xlane.f32.xlu1 %v759_v63  ;;  %v4843_v22 = vshll.u32 %v623_v18, 16  ;;  %v833_v63 = vcvt.f32.s32 %v4683_v52  ;;  %v959_v52 = vcvt.f32.s32 %v4735_v20  ;;  %v4876_v11 = vshll.u32 %v917_v26, 16 }
 0x253   :  { %v4847_v15 = vshll.u32 %v861_v32, 16  ;;  %v4884_v0 = vshll.u32 %v945_v33, 16  ;;  %v4886_v37 = vshll.u32 %v707_v25, 16  ;;  %v4890_v62 = vshll.u32 %v987_v49, 16 }
 0x254   :  { %v4862_v13 = vshll.u32 %v833_v63, 16  ;;  %v4880_v39 = vshll.u32 %v959_v52, 16  ;;  %v721_v35 = vcvt.f32.s32 %v4754_v5  ;;  %v4893_v18 = vshll.u32 %v735_v12, 16 }
 0x255   :  { %v4895_v32 = vshll.u32 %v973_v6, 16  ;;  %v749_v7 = vcvt.f32.s32 %v4765_v9  ;;  %vm3757_vm11 = vcmask 786112   ;;  %vm3778_vm13 = vcmask 982912  }
 0x256   :  { %970 = vmin.xlane.f32.xlu0 %v969_v54  ;;  %984 = vmin.xlane.f32.xlu1 %v983_v23  ;;  %v931_v54 = vcvt.f32.s32 %v4706_v8  ;;  %v4853_v23 = vshll.u32 %v903_v14, 16  ;;  %v693_v8 = vcvt.f32.s32 %v4737_v24  ;;  %v4882_v24 = vshll.u32 %v665_v45, 16 }
 0x257   :  { %5810 = vst [vmem:[#allocation7_spill] sm:$0xff] %v4895_v32  ;;  %v763_v14 = vcvt.f32.s32 %v4771_v10  ;;  %v4906_v52 = vshll.u32 %v721_v35, 16  ;;  %v4910_v33 = vshll.u32 %v749_v7, 16  ;;  %vm3771_vm14 = vcmask 917312  }
 0x258   :  { %v4870_v30 = vshll.u32 %v931_v54, 16  ;;  %v4888_v4 = vshll.u32 %v693_v8, 16  ;;  %vm3785_vm15 = vcmask 1048512  }
 0x259   :  { %v4912_v25 = vshll.u32 %v763_v14, 16 }
 0x293   :  { %v565_v20 = vpop.xlane.xlu1 %564 }
 0x294   :  { %v566_v29 = vcvt.f32.s32 %v565_v20 }
 0x296   :  { %v569_v56 = vadd.s32 %v568_v16, %v566_v29 }
 0x297   :  { %v789_v63 = vpop.xlane.xlu1 %788 }
 0x298   :  { %v790_v34 = vcvt.f32.s32 %v789_v63  ;;  %v1025_v46 = vrot.slane %v569_v56, %v4804_v27  ;;  %v1029_v54 = vrot.slane %v569_v56, %v4811_v19  ;;  %v1033_v38 = vrot.slane %v569_v56, %v4816_v2 }
 0x299   :  { %v1037_v26 = vrot.slane %v569_v56, %v4819_v3  ;;  %v1041_v5 = vrot.slane %v569_v56, %v4823_v17  ;;  %v1045_v16 = vrot.slane %v569_v56, %v4826_v60  ;;  %v1049_v48 = vrot.slane %v569_v56, %v4829_v59 }
 0x29a   :  { %v793_v9 = vadd.s32 %v4791_v42, %v790_v34  ;;  %v1053_v10 = vrot.slane %v569_v56, %v4836_v36  ;;  %v2063_v45 = vcombine.low %v1025_v46, %v1029_v54 }
 0x29b   :  { %v551_v8 = vpop.xlane.xlu1 %550  ;;  %v2064_v49 = vcombine.low %v1033_v38, %v1037_v26  ;;  %v2065_v12 = vcombine.low %v1041_v5, %v1045_v16 }
 0x29c   :  { %v552_v6 = vcvt.f32.s32 %v551_v8  ;;  %v2066_v20 = vcombine.low %v1049_v48, %v1053_v10  ;;  %v2073_v29 = vrot.slane %v2063_v45, %v4839_v50  ;;  %v1537_v63 = vrot.slane %v793_v9, %v4804_v27 }
 0x29d   :  { %v2080_v35 = vrot.slane %v2064_v49, %v4839_v50  ;;  %v2087_v42 = vrot.slane %v2065_v12, %v4839_v50  ;;  %v1541_v56 = vrot.slane %v793_v9, %v4811_v19  ;;  %v1545_v7 = vrot.slane %v793_v9, %v4816_v2 }
 0x29e   :  { %v555_v14 = vadd.s32 %v4793_v40, %v552_v6  ;;  %v2094_v34 = vrot.slane %v2066_v20, %v4839_v50  ;;  %v1549_v46 = vrot.slane %v793_v9, %v4819_v3  ;;  %v1553_v54 = vrot.slane %v793_v9, %v4823_v17 }
 0x29f   :  { %v775_v38 = vpop.xlane.xlu0 %774  ;;  %v2095_v26 = vcombine.low %v2073_v29, %v2080_v35  ;;  %v1557_v5 = vrot.slane %v793_v9, %v4826_v60  ;;  %v1561_v16 = vrot.slane %v793_v9, %v4829_v59  ;;  %v1565_v48 = vrot.slane %v793_v9, %v4836_v36 }
 0x2a0   :  { %v776_v10 = vcvt.f32.s32 %v775_v38  ;;  %v2096_v45 = vcombine.low %v2087_v42, %v2094_v34  ;;  %v2847_v8 = vcombine.low %v1537_v63, %v1541_v56  ;;  %v2848_v49 = vcombine.low %v1545_v7, %v1549_v46 }
 0x2a1   :  { %v2103_v40 = vrot.slane %v2095_v26, %v4839_v50  ;;  %v2849_v12 = vcombine.low %v1553_v54, %v1557_v5  ;;  %v2850_v6 = vcombine.low %v1561_v16, %v1565_v48  ;;  %v993_v20 = vrot.slane %v555_v14, %v4804_v27 }
 0x2a2   :  { %v779_v43 = vadd.s32 %v4797_v47, %v776_v10  ;;  %v2110_v29 = vrot.slane %v2096_v45, %v4839_v50  ;;  %v2857_v35 = vrot.slane %v2847_v8, %v4839_v50  ;;  %v2864_v28 = vrot.slane %v2848_v49, %v4839_v50 }
 0x2a3   :  { %v593_v32 = vpop.xlane.xlu1 %592  ;;  %v2871_v9 = vrot.slane %v2849_v12, %v4839_v50  ;;  %v2878_v63 = vrot.slane %v2850_v6, %v4839_v50  ;;  %v997_v42 = vrot.slane %v555_v14, %v4811_v19  ;;  %v1001_v56 = vrot.slane %v555_v14, %v4816_v2 }
 0x2a4   :  { %v594_v7 = vcvt.f32.s32 %v593_v32  ;;  %v2111_v34 = vcombine.low %v2103_v40, %v2110_v29  ;;  %v2879_v46 = vcombine.low %v2857_v35, %v2864_v28  ;;  %v1005_v47 = vrot.slane %v555_v14, %v4819_v3 }
 0x2a5   :  { %v2880_v54 = vcombine.low %v2871_v9, %v2878_v63  ;;  %v1009_v38 = vrot.slane %v555_v14, %v4823_v17  ;;  %v1013_v26 = vrot.slane %v555_v14, %v4826_v60  ;;  %v1017_v5 = vrot.slane %v555_v14, %v4829_v59 }
 0x2a6   :  { %v4942_v16 = vadd.s32 %v4799_v31, %v594_v7  ;;  %3586 = vperm.xlu1 %4040, %v2111_v34   ;;  %v2887_v48 = vrot.slane %v2879_v46, %v4839_v50  ;;  %v1021_v10 = vrot.slane %v555_v14, %v4836_v36  ;;  %v2014_v32 = vcombine.low %v993_v20, %v997_v42 }
 0x2a7   :  { %v817_v45 = vpop.xlane.xlu1 %816  ;;  %v2894_v28 = vrot.slane %v2880_v54, %v4839_v50  ;;  %v2015_v8 = vcombine.low %v1001_v56, %v1005_v47  ;;  %v2016_v49 = vcombine.low %v1009_v38, %v1013_v26  ;;  %v1505_v40 = vrot.slane %v779_v43, %v4804_v27 }
 0x2a8   :  { %v818_v12 = vcvt.f32.s32 %v817_v45  ;;  %v2017_v6 = vcombine.low %v1017_v5, %v1021_v10  ;;  %v2024_v29 = vrot.slane %v2014_v32, %v4839_v50  ;;  %v1509_v31 = vrot.slane %v779_v43, %v4811_v19 }
 0x2a9   :  { %v2895_v35 = vcombine.low %v2887_v48, %v2894_v28  ;;  %v2031_v9 = vrot.slane %v2015_v8, %v4839_v50  ;;  %v2038_v63 = vrot.slane %v2016_v49, %v4839_v50  ;;  %v1513_v14 = vrot.slane %v779_v43, %v4816_v2 }
 0x2aa   :  { %v4954_v20 = vadd.s32 %v4795_v61, %v818_v12  ;;  %v2045_v42 = vrot.slane %v2017_v6, %v4839_v50  ;;  %v1517_v56 = vrot.slane %v779_v43, %v4819_v3  ;;  %v1521_v7 = vrot.slane %v779_v43, %v4823_v17 }
 0x2ab   :  { %3634 = vperm.xlu0 %4041, %v2895_v35   ;;  %v579_v34 = vpop.xlane.xlu1 %578  ;;  %v803_v46 = vpop.xlane.xlu0 %802  ;;  %v2046_v47 = vcombine.low %v2024_v29, %v2031_v9  ;;  %v1525_v54 = vrot.slane %v779_v43, %v4826_v60  ;;  %v1529_v38 = vrot.slane %v779_v43, %v4829_v59  ;;  %v1533_v26 = vrot.slane %v779_v43, %v4836_v36 }
 0x2ac   :  { %v580_v5 = vcvt.f32.s32 %v579_v34  ;;  %v804_v48 = vcvt.f32.s32 %v803_v46  ;;  %v2047_v61 = vcombine.low %v2038_v63, %v2045_v42  ;;  %v2798_v10 = vcombine.low %v1505_v40, %v1509_v31 }
 0x2ad   :  { %v2054_v32 = vrot.slane %v2046_v47, %v4839_v50  ;;  %v2799_v45 = vcombine.low %v1513_v14, %v1517_v56  ;;  %v2800_v28 = vcombine.low %v1521_v7, %v1525_v54  ;;  %v2801_v8 = vcombine.low %v1529_v38, %v1533_v26 }
 0x2ae   :  { %v4964_v49 = vadd.s32 %v4831_v58, %v580_v5  ;;  %v4967_v12 = vadd.s32 %v4833_v41, %v804_v48  ;;  %v2061_v6 = vrot.slane %v2047_v61, %v4839_v50  ;;  %v2808_v29 = vrot.slane %v2798_v10, %v4839_v50 }
 0x2af   :  { %v621_v43 = vpop.xlane.xlu1 %620  ;;  %v2815_v35 = vrot.slane %v2799_v45, %v4839_v50  ;;  %v2822_v40 = vrot.slane %v2800_v28, %v4839_v50  ;;  %v2829_v31 = vrot.slane %v2801_v8, %v4839_v50  ;;  %v1089_v9 = vrot.slane %v4942_v16, %v4804_v27 }
 0x2b0   :  { %v2062_v63 = vcombine.low %v2054_v32, %v2061_v6  ;;  %v622_v58 = vcvt.f32.s32 %v621_v43  ;;  %v1093_v41 = vrot.slane %v4942_v16, %v4811_v19  ;;  %v1097_v14 = vrot.slane %v4942_v16, %v4816_v2 }
 0x2b1   :  { %v2830_v42 = vcombine.low %v2808_v29, %v2815_v35  ;;  %v2831_v56 = vcombine.low %v2822_v40, %v2829_v31  ;;  %v1101_v7 = vrot.slane %v4942_v16, %v4819_v3  ;;  %v1105_v34 = vrot.slane %v4942_v16, %v4823_v17 }
 0x2b2   :  { %3583 = vperm.xlu0 %4041, %v2062_v63   ;;  %v4985_v46 = vadd.s32 %v4843_v22, %v622_v58  ;;  %v1109_v47 = vrot.slane %v4942_v16, %v4826_v60  ;;  %v1113_v54 = vrot.slane %v4942_v16, %v4829_v59  ;;  %v1117_v38 = vrot.slane %v4942_v16, %v4836_v36 }
 0x2b3   :  { %v2838_v26 = vrot.slane %v2830_v42, %v4839_v50  ;;  %v2845_v5 = vrot.slane %v2831_v56, %v4839_v50  ;;  %v845_v48 = vpop.xlane.xlu1 %844  ;;  %v2161_v61 = vcombine.low %v1089_v9, %v1093_v41  ;;  %v2162_v10 = vcombine.low %v1097_v14, %v1101_v7 }
 0x2b4   :  { %v846_v32 = vcvt.f32.s32 %v845_v48  ;;  %v2163_v45 = vcombine.low %v1105_v34, %v1109_v47  ;;  %v2164_v22 = vcombine.low %v1113_v54, %v1117_v38  ;;  %v1601_v28 = vrot.slane %v4954_v20, %v4804_v27 }
 0x2b5   :  { %v2846_v8 = vcombine.low %v2838_v26, %v2845_v5  ;;  %v2171_v6 = vrot.slane %v2161_v61, %v4839_v50  ;;  %v2178_v29 = vrot.slane %v2162_v10, %v4839_v50  ;;  %v1605_v16 = vrot.slane %v4954_v20, %v4811_v19 }
 0x2b6   :  { %v5002_v43 = vadd.s32 %v4806_v53, %v846_v32  ;;  %v2185_v35 = vrot.slane %v2163_v45, %v4839_v50  ;;  %v2192_v40 = vrot.slane %v2164_v22, %v4839_v50  ;;  %v1609_v31 = vrot.slane %v4954_v20, %v4816_v2 }
 0x2b7   :  { %3631 = vperm.xlu1 %4040, %v2846_v8   ;;  %v2193_v9 = vcombine.low %v2171_v6, %v2178_v29  ;;  %v607_v63 = vpop.xlane.xlu1 %606  ;;  %v831_v58 = vpop.xlane.xlu0 %830  ;;  %v1613_v41 = vrot.slane %v4954_v20, %v4819_v3  ;;  %v1617_v14 = vrot.slane %v4954_v20, %v4823_v17  ;;  %v1621_v53 = vrot.slane %v4954_v20, %v4826_v60 }
 0x2b8   :  { %v2194_v42 = vcombine.low %v2185_v35, %v2192_v40  ;;  %v608_v56 = vcvt.f32.s32 %v607_v63  ;;  %v832_v7 = vcvt.f32.s32 %v831_v58  ;;  %v1625_v34 = vrot.slane %v4954_v20, %v4829_v59 }
 0x2b9   :  { %v2201_v47 = vrot.slane %v2193_v9, %v4839_v50  ;;  %v1629_v54 = vrot.slane %v4954_v20, %v4836_v36  ;;  %v2945_v38 = vcombine.low %v1601_v28, %v1605_v16  ;;  %v2946_v26 = vcombine.low %v1609_v31, %v1613_v41 }
 0x2ba   :  { %v2208_v5 = vrot.slane %v2194_v42, %v4839_v50  ;;  %v5021_v48 = vadd.s32 %v4849_v55, %v608_v56  ;;  %v5024_v61 = vadd.s32 %v4862_v13, %v832_v7  ;;  %v2947_v10 = vcombine.low %v1617_v14, %v1621_v53 }
 0x2bb   :  { %v2948_v32 = vcombine.low %v1625_v34, %v1629_v54  ;;  %v2955_v45 = vrot.slane %v2945_v38, %v4839_v50  ;;  %v2962_v22 = vrot.slane %v2946_v26, %v4839_v50  ;;  %v649_v8 = vpop.xlane.xlu1 %648  ;;  %v1057_v20 = vrot.slane %v4964_v49, %v4804_v27 }
 0x2bc   :  { %v2209_v28 = vcombine.low %v2201_v47, %v2208_v5  ;;  %v2969_v6 = vrot.slane %v2947_v10, %v4839_v50  ;;  %v650_v29 = vcvt.f32.s32 %v649_v8  ;;  %v1061_v55 = vrot.slane %v4964_v49, %v4811_v19 }
 0x2bd   :  { %v2976_v13 = vrot.slane %v2948_v32, %v4839_v50  ;;  %v2977_v16 = vcombine.low %v2955_v45, %v2962_v22  ;;  %v1065_v35 = vrot.slane %v4964_v49, %v4816_v2  ;;  %v1069_v40 = vrot.slane %v4964_v49, %v4819_v3 }
 0x2be   :  { %3592 = vperm.xlu1 %4040, %v2209_v28   ;;  %v5039_v31 = vadd.s32 %v4868_v21, %v650_v29  ;;  %v1073_v9 = vrot.slane %v4964_v49, %v4823_v17  ;;  %v1077_v63 = vrot.slane %v4964_v49, %v4826_v60  ;;  %v1081_v58 = vrot.slane %v4964_v49, %v4829_v59 }
 0x2bf   :  { %v2978_v41 = vcombine.low %v2969_v6, %v2976_v13  ;;  %v2985_v14 = vrot.slane %v2977_v16, %v4839_v50  ;;  %v1085_v53 = vrot.slane %v4964_v49, %v4836_v36  ;;  %v2112_v42 = vcombine.low %v1057_v20, %v1061_v55  ;;  %v873_v56 = vpop.xlane.xlu1 %872  ;;  %v635_v7 = vpop.xlane.xlu0 %634 }
 0x2c0   :  { %v2113_v21 = vcombine.low %v1065_v35, %v1069_v40  ;;  %v2114_v34 = vcombine.low %v1073_v9, %v1077_v63  ;;  %v874_v47 = vcvt.f32.s32 %v873_v56  ;;  %v636_v54 = vcvt.f32.s32 %v635_v7 }
 0x2c1   :  { %v2992_v38 = vrot.slane %v2978_v41, %v4839_v50  ;;  %v2115_v26 = vcombine.low %v1081_v58, %v1085_v53  ;;  %v2122_v5 = vrot.slane %v2112_v42, %v4839_v50  ;;  %v1569_v10 = vrot.slane %v4967_v12, %v4804_v27 }
 0x2c2   :  { %v2129_v32 = vrot.slane %v2113_v21, %v4839_v50  ;;  %v2136_v45 = vrot.slane %v2114_v34, %v4839_v50  ;;  %v5057_v49 = vadd.s32 %v4841_v1, %v874_v47  ;;  %v5060_v22 = vadd.s32 %v4874_v44, %v636_v54 }
 0x2c3   :  { %v2993_v8 = vcombine.low %v2985_v14, %v2992_v38  ;;  %v2143_v20 = vrot.slane %v2115_v26, %v4839_v50  ;;  %v1573_v28 = vrot.slane %v4967_v12, %v4811_v19  ;;  %v1577_v6 = vrot.slane %v4967_v12, %v4816_v2  ;;  %v677_v29 = vpop.xlane.xlu1 %676  ;;  %v859_v16 = vpop.xlane.xlu0 %858 }
 0x2c4   :  { %v2144_v55 = vcombine.low %v2122_v5, %v2129_v32  ;;  %v1581_v13 = vrot.slane %v4967_v12, %v4819_v3  ;;  %v1585_v1 = vrot.slane %v4967_v12, %v4823_v17  ;;  %v1589_v44 = vrot.slane %v4967_v12, %v4826_v60 }
 0x2c5   :  { %3640 = vperm.xlu0 %4041, %v2993_v8   ;;  %v2145_v35 = vcombine.low %v2136_v45, %v2143_v20  ;;  %v1593_v40 = vrot.slane %v4967_v12, %v4829_v59  ;;  %v1597_v9 = vrot.slane %v4967_v12, %v4836_v36  ;;  %v2896_v63 = vcombine.low %v1569_v10, %v1573_v28 }
 0x2c6   :  { %v2152_v58 = vrot.slane %v2144_v55, %v4839_v50  ;;  %v2897_v41 = vcombine.low %v1577_v6, %v1581_v13  ;;  %v2898_v14 = vcombine.low %v1585_v1, %v1589_v44  ;;  %v678_v53 = vcvt.f32.s32 %v677_v29 }
 0x2c7   :  { %v2159_v42 = vrot.slane %v2145_v35, %v4839_v50  ;;  %v2899_v56 = vcombine.low %v1593_v40, %v1597_v9  ;;  %v2906_v7 = vrot.slane %v2896_v63, %v4839_v50  ;;  %v860_v21 = vcvt.f32.s32 %v859_v16 }
 0x2c8   :  { %v2913_v34 = vrot.slane %v2897_v41, %v4839_v50  ;;  %v2920_v47 = vrot.slane %v2898_v14, %v4839_v50  ;;  %v5083_v54 = vadd.s32 %v4878_v51, %v678_v53  ;;  %v1665_v12 = vrot.slane %v5002_v43, %v4804_v27  ;;  %v901_v41 = vpop.xlane.xlu1 %900 }
 0x2c9   :  { %v2160_v38 = vcombine.low %v2152_v58, %v2159_v42  ;;  %v2927_v26 = vrot.slane %v2899_v56, %v4839_v50  ;;  %v5089_v5 = vadd.s32 %v4847_v15, %v860_v21  ;;  %v1669_v10 = vrot.slane %v5002_v43, %v4811_v19 }
 0x2ca   :  { %v2928_v32 = vcombine.low %v2906_v7, %v2913_v34  ;;  %v1673_v45 = vrot.slane %v5002_v43, %v4816_v2  ;;  %v1677_v51 = vrot.slane %v5002_v43, %v4819_v3  ;;  %v1681_v8 = vrot.slane %v5002_v43, %v4823_v17  ;;  %v663_v7 = vpop.xlane.xlu0 %662 }
 0x2cb   :  { %3589 = vperm.xlu1 %4040, %v2160_v38   ;;  %v2929_v20 = vcombine.low %v2920_v47, %v2927_v26  ;;  %v1685_v28 = vrot.slane %v5002_v43, %v4826_v60  ;;  %v1689_v15 = vrot.slane %v5002_v43, %v4829_v59  ;;  %v1693_v6 = vrot.slane %v5002_v43, %v4836_v36 }
 0x2cc   :  { %v2936_v29 = vrot.slane %v2928_v32, %v4839_v50  ;;  %v3043_v55 = vcombine.low %v1665_v12, %v1669_v10  ;;  %v3044_v13 = vcombine.low %v1673_v45, %v1677_v51  ;;  %v1153_v1 = vrot.slane %v4985_v46, %v4804_v27 }
 0x2cd   :  { %v2943_v44 = vrot.slane %v2929_v20, %v4839_v50  ;;  %v3045_v16 = vcombine.low %v1681_v8, %v1685_v28  ;;  %v3046_v35 = vcombine.low %v1689_v15, %v1693_v6  ;;  %v1157_v40 = vrot.slane %v4985_v46, %v4811_v19 }
 0x2ce   :  { %v3053_v9 = vrot.slane %v3043_v55, %v4839_v50  ;;  %v3060_v63 = vrot.slane %v3044_v13, %v4839_v50  ;;  %v1161_v43 = vrot.slane %v4985_v46, %v4816_v2  ;;  %v1165_v58 = vrot.slane %v4985_v46, %v4819_v3 }
 0x2cf   :  { %v2944_v14 = vcombine.low %v2936_v29, %v2943_v44  ;;  %v3067_v53 = vrot.slane %v3045_v16, %v4839_v50  ;;  %v3074_v42 = vrot.slane %v3046_v35, %v4839_v50  ;;  %v1169_v56 = vrot.slane %v4985_v46, %v4823_v17 }
 0x2d0   :  { %v3075_v21 = vcombine.low %v3053_v9, %v3060_v63  ;;  %v1173_v34 = vrot.slane %v4985_v46, %v4826_v60  ;;  %v1177_v47 = vrot.slane %v4985_v46, %v4829_v59  ;;  %v1181_v12 = vrot.slane %v4985_v46, %v4836_v36 }
 0x2d1   :  { %3637 = vperm.xlu1 %4040, %v2944_v14   ;;  %v3076_v38 = vcombine.low %v3067_v53, %v3074_v42  ;;  %v2259_v26 = vcombine.low %v1153_v1, %v1157_v40  ;;  %v2260_v10 = vcombine.low %v1161_v43, %v1165_v58  ;;  %v902_v32 = vcvt.f32.s32 %v901_v41  ;;  %v887_v58 = vpop.xlane.xlu0 %886 }
 0x2d2   :  { %v3083_v45 = vrot.slane %v3075_v21, %v4839_v50  ;;  %v2261_v51 = vcombine.low %v1169_v56, %v1173_v34  ;;  %v2262_v8 = vcombine.low %v1177_v47, %v1181_v12  ;;  %v664_v20 = vcvt.f32.s32 %v663_v7 }
 0x2d3   :  { %v3090_v28 = vrot.slane %v3076_v38, %v4839_v50  ;;  %v2269_v15 = vrot.slane %v2259_v26, %v4839_v50  ;;  %v2276_v6 = vrot.slane %v2260_v10, %v4839_v50  ;;  %v5132_v29 = vadd.s32 %v4853_v23, %v902_v32  ;;  %v705_v23 = vpop.xlane.xlu1 %704 }
 0x2d4   :  { %v2283_v46 = vrot.slane %v2261_v51, %v4839_v50  ;;  %v2290_v55 = vrot.slane %v2262_v8, %v4839_v50  ;;  %v5137_v13 = vadd.s32 %v4882_v24, %v664_v20  ;;  %v1121_v1 = vrot.slane %v5021_v48, %v4804_v27 }
 0x2d5   :  { %v3091_v44 = vcombine.low %v3083_v45, %v3090_v28  ;;  %v2291_v16 = vcombine.low %v2269_v15, %v2276_v6  ;;  %v1125_v35 = vrot.slane %v5021_v48, %v4811_v19  ;;  %v1129_v40 = vrot.slane %v5021_v48, %v4816_v2 }
 0x2d6   :  { %v2292_v9 = vcombine.low %v2283_v46, %v2290_v55  ;;  %v1133_v63 = vrot.slane %v5021_v48, %v4819_v3  ;;  %v1137_v24 = vrot.slane %v5021_v48, %v4823_v17  ;;  %v1141_v43 = vrot.slane %v5021_v48, %v4826_v60 }
 0x2d7   :  { %3646 = vperm.xlu0 %4041, %v3091_v44   ;;  %v2299_v41 = vrot.slane %v2291_v16, %v4839_v50  ;;  %v1145_v14 = vrot.slane %v5021_v48, %v4829_v59  ;;  %v1149_v53 = vrot.slane %v5021_v48, %v4836_v36  ;;  %v2210_v42 = vcombine.low %v1121_v1, %v1125_v35  ;;  %v929_v15 = vpop.xlane.xlu1 %928 }
 0x2d8   :  { %v2306_v56 = vrot.slane %v2292_v9, %v4839_v50  ;;  %v2211_v7 = vcombine.low %v1129_v40, %v1133_v63  ;;  %v2212_v21 = vcombine.low %v1137_v24, %v1141_v43  ;;  %v706_v34 = vcvt.f32.s32 %v705_v23 }
 0x2d9   :  { %v2213_v47 = vcombine.low %v1145_v14, %v1149_v53  ;;  %v2220_v12 = vrot.slane %v2210_v42, %v4839_v50  ;;  %v888_v38 = vcvt.f32.s32 %v887_v58  ;;  %v1633_v26 = vrot.slane %v5024_v61, %v4804_v27 }
 0x2da   :  { %v2307_v10 = vcombine.low %v2299_v41, %v2306_v56  ;;  %v2227_v32 = vrot.slane %v2211_v7, %v4839_v50  ;;  %v2234_v45 = vrot.slane %v2212_v21, %v4839_v50  ;;  %v5163_v48 = vadd.s32 %v4886_v37, %v706_v34 }
 0x2db   :  { %v2241_v51 = vrot.slane %v2213_v47, %v4839_v50  ;;  %v5167_v8 = vadd.s32 %v4864_v57, %v888_v38  ;;  %v1637_v20 = vrot.slane %v5024_v61, %v4811_v19  ;;  %v1641_v28 = vrot.slane %v5024_v61, %v4816_v2  ;;  %v691_v57 = vpop.xlane.xlu0 %690 }
 0x2dc   :  { %3598 = vperm.xlu1 %4040, %v2307_v10   ;;  %v2242_v6 = vcombine.low %v2220_v12, %v2227_v32  ;;  %v1645_v46 = vrot.slane %v5024_v61, %v4819_v3  ;;  %v1649_v37 = vrot.slane %v5024_v61, %v4823_v17  ;;  %v1653_v55 = vrot.slane %v5024_v61, %v4826_v60 }
 0x2dd   :  { %v2243_v1 = vcombine.low %v2234_v45, %v2241_v51  ;;  %v1657_v44 = vrot.slane %v5024_v61, %v4829_v59  ;;  %v1661_v16 = vrot.slane %v5024_v61, %v4836_v36  ;;  %v2994_v35 = vcombine.low %v1633_v26, %v1637_v20 }
 0x2de   :  { %v2250_v40 = vrot.slane %v2242_v6, %v4839_v50  ;;  %v2995_v23 = vcombine.low %v1641_v28, %v1645_v46  ;;  %v2996_v9 = vcombine.low %v1649_v37, %v1653_v55  ;;  %v930_v63 = vcvt.f32.s32 %v929_v15 }
 0x2df   :  { %v2257_v24 = vrot.slane %v2243_v1, %v4839_v50  ;;  %v2997_v43 = vcombine.low %v1657_v44, %v1661_v16  ;;  %v3004_v58 = vrot.slane %v2994_v35, %v4839_v50  ;;  %v692_v41 = vcvt.f32.s32 %v691_v57  ;;  %v733_v44 = vpop.xlane.xlu1 %732 }
 0x2e0   :  { %v3011_v14 = vrot.slane %v2995_v23, %v4839_v50  ;;  %v3018_v53 = vrot.slane %v2996_v9, %v4839_v50  ;;  %v5189_v42 = vadd.s32 %v4870_v30, %v930_v63  ;;  %v1729_v61 = vrot.slane %v5057_v49, %v4804_v27  ;;  %v915_v9 = vpop.xlane.xlu0 %914 }
 0x2e1   :  { %v2258_v56 = vcombine.low %v2250_v40, %v2257_v24  ;;  %v3025_v7 = vrot.slane %v2997_v43, %v4839_v50  ;;  %v5195_v21 = vadd.s32 %v4888_v4, %v692_v41  ;;  %v1733_v34 = vrot.slane %v5057_v49, %v4811_v19 }
 0x2e2   :  { %v3026_v47 = vcombine.low %v3004_v58, %v3011_v14  ;;  %v1737_v12 = vrot.slane %v5057_v49, %v4816_v2  ;;  %v1741_v30 = vrot.slane %v5057_v49, %v4819_v3  ;;  %v1745_v38 = vrot.slane %v5057_v49, %v4823_v17 }
 0x2e3   :  { %3595 = vperm.xlu1 %4040, %v2258_v56   ;;  %v3027_v26 = vcombine.low %v3018_v53, %v3025_v7  ;;  %v1749_v10 = vrot.slane %v5057_v49, %v4826_v60  ;;  %v1753_v4 = vrot.slane %v5057_v49, %v4829_v59  ;;  %v1757_v32 = vrot.slane %v5057_v49, %v4836_v36 }
 0x2e4   :  { %v3034_v45 = vrot.slane %v3026_v47, %v4839_v50  ;;  %v3141_v51 = vcombine.low %v1729_v61, %v1733_v34  ;;  %v3142_v20 = vcombine.low %v1737_v12, %v1741_v30  ;;  %v1217_v28 = vrot.slane %v5039_v31, %v4804_v27 }
 0x2e5   :  { %v3041_v15 = vrot.slane %v3027_v26, %v4839_v50  ;;  %v3143_v6 = vcombine.low %v1745_v38, %v1749_v10  ;;  %v3144_v46 = vcombine.low %v1753_v4, %v1757_v32  ;;  %v1221_v37 = vrot.slane %v5039_v31, %v4811_v19 }
 0x2e6   :  { %v3151_v55 = vrot.slane %v3141_v51, %v4839_v50  ;;  %v3158_v57 = vrot.slane %v3142_v20, %v4839_v50  ;;  %v1225_v49 = vrot.slane %v5039_v31, %v4816_v2  ;;  %v1229_v1 = vrot.slane %v5039_v31, %v4819_v3 }
 0x2e7   :  { %v3042_v16 = vcombine.low %v3034_v45, %v3041_v15  ;;  %v3165_v35 = vrot.slane %v3143_v6, %v4839_v50  ;;  %v3172_v40 = vrot.slane %v3144_v46, %v4839_v50  ;;  %v1233_v23 = vrot.slane %v5039_v31, %v4823_v17 }
 0x2e8   :  { %v3173_v63 = vcombine.low %v3151_v55, %v3158_v57  ;;  %v1237_v24 = vrot.slane %v5039_v31, %v4826_v60  ;;  %v1241_v43 = vrot.slane %v5039_v31, %v4829_v59  ;;  %v1245_v58 = vrot.slane %v5039_v31, %v4836_v36 }
 0x2e9   :  { %3643 = vperm.xlu1 %4040, %v3042_v16   ;;  %v3174_v41 = vcombine.low %v3165_v35, %v3172_v40  ;;  %v2357_v14 = vcombine.low %v1217_v28, %v1221_v37  ;;  %v2358_v53 = vcombine.low %v1225_v49, %v1229_v1  ;;  %v734_v61 = vcvt.f32.s32 %v733_v44 }
 0x2ea   :  { %v3181_v56 = vrot.slane %v3173_v63, %v4839_v50  ;;  %v2359_v7 = vcombine.low %v1233_v23, %v1237_v24  ;;  %v2360_v34 = vcombine.low %v1241_v43, %v1245_v58  ;;  %v916_v47 = vcvt.f32.s32 %v915_v9  ;;  %v957_v58 = vpop.xlane.xlu1 %956 }
 0x2eb   :  { %v3188_v12 = vrot.slane %v3174_v41, %v4839_v50  ;;  %v2367_v30 = vrot.slane %v2357_v14, %v4839_v50  ;;  %v2374_v38 = vrot.slane %v2358_v53, %v4839_v50  ;;  %v5238_v26 = vadd.s32 %v4893_v18, %v734_v61  ;;  %v719_v41 = vpop.xlane.xlu0 %718 }
 0x2ec   :  { %v2381_v31 = vrot.slane %v2359_v7, %v4839_v50  ;;  %v2388_v10 = vrot.slane %v2360_v34, %v4839_v50  ;;  %v5243_v4 = vadd.s32 %v4876_v11, %v916_v47  ;;  %v1281_v32 = vrot.slane %v5083_v54, %v4804_v27 }
 0x2ed   :  { %v3189_v45 = vcombine.low %v3181_v56, %v3188_v12  ;;  %v2389_v51 = vcombine.low %v2367_v30, %v2374_v38  ;;  %v1285_v20 = vrot.slane %v5083_v54, %v4811_v19  ;;  %v1289_v28 = vrot.slane %v5083_v54, %v4816_v2 }
 0x2ee   :  { %v2390_v18 = vcombine.low %v2381_v31, %v2388_v10  ;;  %v1293_v15 = vrot.slane %v5083_v54, %v4819_v3  ;;  %v1297_v6 = vrot.slane %v5083_v54, %v4823_v17  ;;  %v1301_v11 = vrot.slane %v5083_v54, %v4826_v60 }
 0x2ef   :  { %3652 = vperm.xlu0 %4041, %v3189_v45   ;;  %v2397_v46 = vrot.slane %v2389_v51, %v4839_v50  ;;  %v1305_v37 = vrot.slane %v5083_v54, %v4829_v59  ;;  %v1309_v55 = vrot.slane %v5083_v54, %v4836_v36  ;;  %v2455_v57 = vcombine.low %v1281_v32, %v1285_v20 }
 0x2f0   :  { %v2404_v49 = vrot.slane %v2390_v18, %v4839_v50  ;;  %v2456_v1 = vcombine.low %v1289_v28, %v1293_v15  ;;  %v2457_v44 = vcombine.low %v1297_v6, %v1301_v11  ;;  %v1185_v16 = vrot.slane %v5060_v22, %v4804_v27 }
 0x2f1   :  { %v2458_v35 = vcombine.low %v1305_v37, %v1309_v55  ;;  %v2465_v40 = vrot.slane %v2455_v57, %v4839_v50  ;;  %v1189_v23 = vrot.slane %v5060_v22, %v4811_v19  ;;  %v1193_v9 = vrot.slane %v5060_v22, %v4816_v2 }
 0x2f2   :  { %v2405_v63 = vcombine.low %v2397_v46, %v2404_v49  ;;  %v2472_v54 = vrot.slane %v2456_v1, %v4839_v50  ;;  %v2479_v24 = vrot.slane %v2457_v44, %v4839_v50  ;;  %v1197_v43 = vrot.slane %v5060_v22, %v4819_v3 }
 0x2f3   :  { %v2486_v14 = vrot.slane %v2458_v35, %v4839_v50  ;;  %v1201_v53 = vrot.slane %v5060_v22, %v4823_v17  ;;  %v1205_v61 = vrot.slane %v5060_v22, %v4826_v60  ;;  %v1209_v56 = vrot.slane %v5060_v22, %v4829_v59 }
 0x2f4   :  { %3604 = vperm.xlu1 %4040, %v2405_v63   ;;  %v2487_v7 = vcombine.low %v2465_v40, %v2472_v54  ;;  %v1213_v34 = vrot.slane %v5060_v22, %v4836_v36  ;;  %v2308_v47 = vcombine.low %v1185_v16, %v1189_v23  ;;  %v2309_v12 = vcombine.low %v1193_v9, %v1197_v43 }
 0x2f5   :  { %v2488_v30 = vcombine.low %v2479_v24, %v2486_v14  ;;  %v2310_v38 = vcombine.low %v1201_v53, %v1205_v61  ;;  %v958_v31 = vcvt.f32.s32 %v957_v58  ;;  %v720_v10 = vcvt.f32.s32 %v719_v41  ;;  %v943_v53 = vpop.xlane.xlu0 %942 }
 0x2f6   :  { %v2495_v32 = vrot.slane %v2487_v7, %v4839_v50  ;;  %v2311_v45 = vcombine.low %v1209_v56, %v1213_v34  ;;  %v2318_v51 = vrot.slane %v2308_v47, %v4839_v50  ;;  %v2325_v20 = vrot.slane %v2309_v12, %v4839_v50 }
 0x2f7   :  { %v2502_v28 = vrot.slane %v2488_v30, %v4839_v50  ;;  %v2332_v18 = vrot.slane %v2310_v38, %v4839_v50  ;;  %v5289_v15 = vadd.s32 %v4880_v39, %v958_v31  ;;  %v5292_v22 = vadd.s32 %v4906_v52, %v720_v10 }
 0x2f8   :  { %v2339_v6 = vrot.slane %v2311_v45, %v4839_v50  ;;  %v2340_v11 = vcombine.low %v2318_v51, %v2325_v20  ;;  %v1793_v46 = vrot.slane %v5132_v29, %v4804_v27  ;;  %v1797_v37 = vrot.slane %v5132_v29, %v4811_v19 }
 0x2f9   :  { %v2503_v55 = vcombine.low %v2495_v32, %v2502_v28  ;;  %v1801_v57 = vrot.slane %v5132_v29, %v4816_v2  ;;  %v1805_v39 = vrot.slane %v5132_v29, %v4819_v3  ;;  %v1809_v52 = vrot.slane %v5132_v29, %v4823_v17 }
 0x2fa   :  { %v2341_v49 = vcombine.low %v2332_v18, %v2339_v6  ;;  %v2348_v1 = vrot.slane %v2340_v11, %v4839_v50  ;;  %v1813_v44 = vrot.slane %v5132_v29, %v4826_v60  ;;  %v1817_v16 = vrot.slane %v5132_v29, %v4829_v59 }
 0x2fb   :  { %3610 = vperm.xlu0 %4041, %v2503_v55   ;;  %v1821_v35 = vrot.slane %v5132_v29, %v4836_v36  ;;  %v3239_v40 = vcombine.low %v1793_v46, %v1797_v37  ;;  %v3240_v23 = vcombine.low %v1801_v57, %v1805_v39  ;;  %v1697_v9 = vrot.slane %v5089_v5, %v4804_v27 }
 0x2fc   :  { %v2355_v63 = vrot.slane %v2341_v49, %v4839_v50  ;;  %v3241_v54 = vcombine.low %v1809_v52, %v1813_v44  ;;  %v1701_v24 = vrot.slane %v5089_v5, %v4811_v19  ;;  %v1705_v43 = vrot.slane %v5089_v5, %v4816_v2  ;;  %v761_v44 = vpop.xlane.xlu1 %760 }
 0x2fd   :  { %v3242_v58 = vcombine.low %v1817_v16, %v1821_v35  ;;  %v3249_v41 = vrot.slane %v3239_v40, %v4839_v50  ;;  %v3256_v14 = vrot.slane %v3240_v23, %v4839_v50  ;;  %v1709_v29 = vrot.slane %v5089_v5, %v4819_v3  ;;  %v747_v16 = vpop.xlane.xlu0 %746 }
 0x2fe   :  { %v2356_v61 = vcombine.low %v2348_v1, %v2355_v63  ;;  %v3263_v56 = vrot.slane %v3241_v54, %v4839_v50  ;;  %v1713_v7 = vrot.slane %v5089_v5, %v4823_v17  ;;  %v1717_v34 = vrot.slane %v5089_v5, %v4826_v60 }
 0x2ff   :  { %v3270_v47 = vrot.slane %v3242_v58, %v4839_v50  ;;  %v3271_v12 = vcombine.low %v3249_v41, %v3256_v14  ;;  %v1721_v30 = vrot.slane %v5089_v5, %v4829_v59  ;;  %v1725_v38 = vrot.slane %v5089_v5, %v4836_v36 }
 0x300   :  { %3601 = vperm.xlu1 %4040, %v2356_v61   ;;  %v3092_v31 = vcombine.low %v1697_v9, %v1701_v24  ;;  %v3093_v10 = vcombine.low %v1705_v43, %v1709_v29  ;;  %v3094_v32 = vcombine.low %v1713_v7, %v1717_v34  ;;  %v944_v45 = vcvt.f32.s32 %v943_v53 }
 0x301   :  { %v3272_v51 = vcombine.low %v3263_v56, %v3270_v47  ;;  %v3279_v20 = vrot.slane %v3271_v12, %v4839_v50  ;;  %v3095_v28 = vcombine.low %v1721_v30, %v1725_v38  ;;  %v1249_v18 = vrot.slane %v5137_v13, %v4804_v27 }
 0x302   :  { %v3102_v6 = vrot.slane %v3092_v31, %v4839_v50  ;;  %v3109_v11 = vrot.slane %v3093_v10, %v4839_v50  ;;  %v3116_v46 = vrot.slane %v3094_v32, %v4839_v50  ;;  %v5340_v5 = vadd.s32 %v4884_v0, %v944_v45 }
 0x303   :  { %v3286_v37 = vrot.slane %v3272_v51, %v4839_v50  ;;  %v3123_v55 = vrot.slane %v3095_v28, %v4839_v50  ;;  %v1253_v57 = vrot.slane %v5137_v13, %v4811_v19  ;;  %v1257_v39 = vrot.slane %v5137_v13, %v4816_v2 }
 0x304   :  { %v3124_v52 = vcombine.low %v3102_v6, %v3109_v11  ;;  %v1261_v49 = vrot.slane %v5137_v13, %v4819_v3  ;;  %v1265_v1 = vrot.slane %v5137_v13, %v4823_v17  ;;  %v1269_v0 = vrot.slane %v5137_v13, %v4826_v60 }
 0x305   :  { %v3287_v35 = vcombine.low %v3279_v20, %v3286_v37  ;;  %v3125_v40 = vcombine.low %v3116_v46, %v3123_v55  ;;  %v1273_v23 = vrot.slane %v5137_v13, %v4829_v59  ;;  %v1277_v9 = vrot.slane %v5137_v13, %v4836_v36 }
 0x306   :  { %v3132_v63 = vrot.slane %v3124_v52, %v4839_v50  ;;  %v2406_v54 = vcombine.low %v1249_v18, %v1253_v57  ;;  %v2407_v24 = vcombine.low %v1257_v39, %v1261_v49  ;;  %v2408_v43 = vcombine.low %v1265_v1, %v1269_v0 }
 0x307   :  { %3658 = vperm.xlu0 %4041, %v3287_v35   ;;  %v3139_v58 = vrot.slane %v3125_v40, %v4839_v50  ;;  %v2409_v41 = vcombine.low %v1273_v23, %v1277_v9  ;;  %v762_v14 = vcvt.f32.s32 %v761_v44  ;;  %v748_v29 = vcvt.f32.s32 %v747_v16  ;;  %v971_v16 = vpop.xlane.xlu0 %970 }
 0x308   :  { %v2416_v53 = vrot.slane %v2406_v54, %v4839_v50  ;;  %v2423_v61 = vrot.slane %v2407_v24, %v4839_v50  ;;  %v2430_v56 = vrot.slane %v2408_v43, %v4839_v50  ;;  %v1857_v13 = vrot.slane %v5189_v42, %v4804_v27 }
 0x309   :  { %v3140_v7 = vcombine.low %v3132_v63, %v3139_v58  ;;  %v2437_v34 = vrot.slane %v2409_v41, %v4839_v50  ;;  %v5367_v47 = vadd.s32 %v4912_v25, %v762_v14  ;;  %v5370_v12 = vadd.s32 %v4910_v33, %v748_v29 }
 0x30a   :  { %v2438_v30 = vcombine.low %v2416_v53, %v2423_v61  ;;  %v1861_v38 = vrot.slane %v5189_v42, %v4811_v19  ;;  %v1865_v31 = vrot.slane %v5189_v42, %v4816_v2  ;;  %v1869_v10 = vrot.slane %v5189_v42, %v4819_v3 }
 0x30b   :  { %3649 = vperm.xlu1 %4040, %v3140_v7   ;;  %v2439_v32 = vcombine.low %v2430_v56, %v2437_v34  ;;  %v1873_v45 = vrot.slane %v5189_v42, %v4823_v17  ;;  %v1877_v25 = vrot.slane %v5189_v42, %v4826_v60  ;;  %v1881_v33 = vrot.slane %v5189_v42, %v4829_v59  ;;  %v5811_v34 = vld [vmem:[#allocation7_spill] sm:$0xff] }
 0x30c   :  { %v2446_v51 = vrot.slane %v2438_v30, %v4839_v50  ;;  %v1885_v20 = vrot.slane %v5189_v42, %v4836_v36  ;;  %v3337_v28 = vcombine.low %v1857_v13, %v1861_v38  ;;  %v3338_v18 = vcombine.low %v1865_v31, %v1869_v10  ;;  %v985_v42 = vpop.xlane.xlu1 %984 }
 0x30d   :  { %v2453_v6 = vrot.slane %v2439_v32, %v4839_v50  ;;  %v3339_v11 = vcombine.low %v1873_v45, %v1877_v25  ;;  %v1761_v46 = vrot.slane %v5167_v8, %v4804_v27  ;;  %v1765_v37 = vrot.slane %v5167_v8, %v4811_v19 }
 0x30e   :  { %v3340_v55 = vcombine.low %v1881_v33, %v1885_v20  ;;  %v3347_v57 = vrot.slane %v3337_v28, %v4839_v50  ;;  %v3354_v39 = vrot.slane %v3338_v18, %v4839_v50  ;;  %v1769_v52 = vrot.slane %v5167_v8, %v4816_v2 }
 0x30f   :  { %v2454_v49 = vcombine.low %v2446_v51, %v2453_v6  ;;  %v3361_v1 = vrot.slane %v3339_v11, %v4839_v50  ;;  %v1773_v0 = vrot.slane %v5167_v8, %v4819_v3  ;;  %v1777_v44 = vrot.slane %v5167_v8, %v4823_v17 }
 0x310   :  { %v3368_v35 = vrot.slane %v3340_v55, %v4839_v50  ;;  %v3369_v40 = vcombine.low %v3347_v57, %v3354_v39  ;;  %v1781_v23 = vrot.slane %v5167_v8, %v4826_v60  ;;  %v1785_v9 = vrot.slane %v5167_v8, %v4829_v59 }
 0x311   :  { %3607 = vperm.xlu1 %4040, %v2454_v49   ;;  %v1789_v63 = vrot.slane %v5167_v8, %v4836_v36  ;;  %v3190_v54 = vcombine.low %v1761_v46, %v1765_v37  ;;  %v3191_v24 = vcombine.low %v1769_v52, %v1773_v0  ;;  %v986_v43 = vcvt.f32.s32 %v985_v42 }
 0x312   :  { %v3370_v58 = vcombine.low %v3361_v1, %v3368_v35  ;;  %v3377_v41 = vrot.slane %v3369_v40, %v4839_v50  ;;  %v3192_v14 = vcombine.low %v1777_v44, %v1781_v23  ;;  %v972_v29 = vcvt.f32.s32 %v971_v16 }
 0x313   :  { %v3193_v53 = vcombine.low %v1785_v9, %v1789_v63  ;;  %v3200_v61 = vrot.slane %v3190_v54, %v4839_v50  ;;  %v3207_v56 = vrot.slane %v3191_v24, %v4839_v50  ;;  %v5412_v13 = vadd.s32 %v4890_v62, %v986_v43 }
 0x314   :  { %v3384_v7 = vrot.slane %v3370_v58, %v4839_v50  ;;  %v3214_v8 = vrot.slane %v3192_v14, %v4839_v50  ;;  %v5417_v30 = vadd.s32 %v5811_v34, %v972_v29  ;;  %v1345_v38 = vrot.slane %v5163_v48, %v4804_v27 }
 0x315   :  { %v3221_v31 = vrot.slane %v3193_v53, %v4839_v50  ;;  %v3222_v10 = vcombine.low %v3200_v61, %v3207_v56  ;;  %v1349_v32 = vrot.slane %v5163_v48, %v4811_v19  ;;  %v1353_v62 = vrot.slane %v5163_v48, %v4816_v2 }
 0x316   :  { %v3385_v45 = vcombine.low %v3377_v41, %v3384_v7  ;;  %v1357_v25 = vrot.slane %v5163_v48, %v4819_v3  ;;  %v1361_v33 = vrot.slane %v5163_v48, %v4823_v17  ;;  %v1365_v51 = vrot.slane %v5163_v48, %v4826_v60 }
 0x317   :  { %v3223_v20 = vcombine.low %v3214_v8, %v3221_v31  ;;  %v3230_v28 = vrot.slane %v3222_v10, %v4839_v50  ;;  %v1369_v18 = vrot.slane %v5163_v48, %v4829_v59  ;;  %v1373_v6 = vrot.slane %v5163_v48, %v4836_v36 }
 0x318   :  { %3664 = vperm.xlu0 %4041, %v3385_v45   ;;  %v2553_v11 = vcombine.low %v1345_v38, %v1349_v32  ;;  %v2554_v46 = vcombine.low %v1353_v62, %v1357_v25  ;;  %v2555_v37 = vcombine.low %v1361_v33, %v1365_v51  ;;  %v1825_v55 = vrot.slane %v5243_v4, %v4804_v27 }
 0x319   :  { %v3237_v57 = vrot.slane %v3223_v20, %v4839_v50  ;;  %v2556_v39 = vcombine.low %v1369_v18, %v1373_v6  ;;  %v1829_v52 = vrot.slane %v5243_v4, %v4811_v19  ;;  %v1833_v42 = vrot.slane %v5243_v4, %v4816_v2 }
 0x31a   :  { %v2563_v49 = vrot.slane %v2553_v11, %v4839_v50  ;;  %v2570_v48 = vrot.slane %v2554_v46, %v4839_v50  ;;  %v2577_v1 = vrot.slane %v2555_v37, %v4839_v50  ;;  %v1837_v0 = vrot.slane %v5243_v4, %v4819_v3 }
 0x31b   :  { %v3238_v44 = vcombine.low %v3230_v28, %v3237_v57  ;;  %v2584_v16 = vrot.slane %v2556_v39, %v4839_v50  ;;  %v1841_v35 = vrot.slane %v5243_v4, %v4823_v17  ;;  %v1845_v40 = vrot.slane %v5243_v4, %v4826_v60 }
 0x31c   :  { %v2585_v23 = vcombine.low %v2563_v49, %v2570_v48  ;;  %v1849_v9 = vrot.slane %v5243_v4, %v4829_v59  ;;  %v1853_v63 = vrot.slane %v5243_v4, %v4836_v36  ;;  %v3288_v54 = vcombine.low %v1825_v55, %v1829_v52 }
 0x31d   :  { %3655 = vperm.xlu1 %4040, %v3238_v44   ;;  %v2586_v24 = vcombine.low %v2577_v1, %v2584_v16  ;;  %v3289_v43 = vcombine.low %v1833_v42, %v1837_v0  ;;  %v3290_v58 = vcombine.low %v1841_v35, %v1845_v40  ;;  %v1313_v41 = vrot.slane %v5195_v21, %v4804_v27 }
 0x31e   :  { %v2593_v14 = vrot.slane %v2585_v23, %v4839_v50  ;;  %v3291_v29 = vcombine.low %v1849_v9, %v1853_v63  ;;  %v3298_v53 = vrot.slane %v3288_v54, %v4839_v50  ;;  %v1317_v61 = vrot.slane %v5195_v21, %v4811_v19 }
 0x31f   :  { %v2600_v56 = vrot.slane %v2586_v24, %v4839_v50  ;;  %v3305_v4 = vrot.slane %v3289_v43, %v4839_v50  ;;  %v3312_v7 = vrot.slane %v3290_v58, %v4839_v50  ;;  %v1321_v8 = vrot.slane %v5195_v21, %v4816_v2 }
 0x320   :  { %v3319_v34 = vrot.slane %v3291_v29, %v4839_v50  ;;  %v1325_v38 = vrot.slane %v5195_v21, %v4819_v3  ;;  %v1329_v31 = vrot.slane %v5195_v21, %v4823_v17  ;;  %v1333_v10 = vrot.slane %v5195_v21, %v4826_v60 }
 0x321   :  { %v2601_v32 = vcombine.low %v2593_v14, %v2600_v56  ;;  %v3320_v62 = vcombine.low %v3298_v53, %v3305_v4  ;;  %v1337_v45 = vrot.slane %v5195_v21, %v4829_v59  ;;  %v1341_v25 = vrot.slane %v5195_v21, %v4836_v36 }
 0x322   :  { %v3321_v33 = vcombine.low %v3312_v7, %v3319_v34  ;;  %v2504_v51 = vcombine.low %v1313_v41, %v1317_v61  ;;  %v2505_v20 = vcombine.low %v1321_v8, %v1325_v38  ;;  %v2506_v28 = vcombine.low %v1329_v31, %v1333_v10 }
 0x323   :  { %3616 = vperm.xlu1 %4040, %v2601_v32   ;;  %v3328_v18 = vrot.slane %v3320_v62, %v4839_v50  ;;  %v2507_v6 = vcombine.low %v1337_v45, %v1341_v25  ;;  %v1921_v11 = vrot.slane %v5289_v15, %v4804_v27  ;;  %v1925_v46 = vrot.slane %v5289_v15, %v4811_v19 }
 0x324   :  { %v3335_v37 = vrot.slane %v3321_v33, %v4839_v50  ;;  %v2514_v55 = vrot.slane %v2504_v51, %v4839_v50  ;;  %v2521_v21 = vrot.slane %v2505_v20, %v4839_v50  ;;  %v2528_v57 = vrot.slane %v2506_v28, %v4839_v50 }
 0x325   :  { %v2535_v39 = vrot.slane %v2507_v6, %v4839_v50  ;;  %v1929_v52 = vrot.slane %v5289_v15, %v4816_v2  ;;  %v1933_v42 = vrot.slane %v5289_v15, %v4819_v3  ;;  %v1937_v49 = vrot.slane %v5289_v15, %v4823_v17 }
 0x326   :  { %v3336_v48 = vcombine.low %v3328_v18, %v3335_v37  ;;  %v2536_v1 = vcombine.low %v2514_v55, %v2521_v21  ;;  %v1941_v0 = vrot.slane %v5289_v15, %v4826_v60  ;;  %v1945_v44 = vrot.slane %v5289_v15, %v4829_v59 }
 0x327   :  { %v2537_v16 = vcombine.low %v2528_v57, %v2535_v39  ;;  %v1949_v35 = vrot.slane %v5289_v15, %v4836_v36  ;;  %v3435_v40 = vcombine.low %v1921_v11, %v1925_v46  ;;  %v3436_v23 = vcombine.low %v1929_v52, %v1933_v42 }
 0x328   :  { %3661 = vperm.xlu0 %4041, %v3336_v48   ;;  %v2544_v9 = vrot.slane %v2536_v1, %v4839_v50  ;;  %v3437_v63 = vcombine.low %v1937_v49, %v1941_v0  ;;  %v1409_v54 = vrot.slane %v5238_v26, %v4804_v27  ;;  %v1413_v24 = vrot.slane %v5238_v26, %v4811_v19 }
 0x329   :  { %v2551_v43 = vrot.slane %v2537_v16, %v4839_v50  ;;  %v3438_v58 = vcombine.low %v1945_v44, %v1949_v35  ;;  %v3445_v41 = vrot.slane %v3435_v40, %v4839_v50  ;;  %v3452_v14 = vrot.slane %v3436_v23, %v4839_v50 }
 0x32a   :  { %v3459_v15 = vrot.slane %v3437_v63, %v4839_v50  ;;  %v1417_v29 = vrot.slane %v5238_v26, %v4816_v2  ;;  %v1421_v53 = vrot.slane %v5238_v26, %v4819_v3  ;;  %v1425_v61 = vrot.slane %v5238_v26, %v4823_v17 }
 0x32b   :  { %v2552_v56 = vcombine.low %v2544_v9, %v2551_v43  ;;  %v3466_v4 = vrot.slane %v3438_v58, %v4839_v50  ;;  %v3467_v7 = vcombine.low %v3445_v41, %v3452_v14  ;;  %v1429_v8 = vrot.slane %v5238_v26, %v4826_v60 }
 0x32c   :  { %v1433_v34 = vrot.slane %v5238_v26, %v4829_v59  ;;  %v1437_v38 = vrot.slane %v5238_v26, %v4836_v36  ;;  %v2651_v31 = vcombine.low %v1409_v54, %v1413_v24  ;;  %v2652_v10 = vcombine.low %v1417_v29, %v1421_v53 }
 0x32d   :  { %3613 = vperm.xlu1 %4040, %v2552_v56   ;;  %v3468_v32 = vcombine.low %v3459_v15, %v3466_v4  ;;  %v3475_v62 = vrot.slane %v3467_v7, %v4839_v50  ;;  %v2653_v45 = vcombine.low %v1425_v61, %v1429_v8  ;;  %v1889_v25 = vrot.slane %v5340_v5, %v4804_v27 }
 0x32e   :  { %v2654_v33 = vcombine.low %v1433_v34, %v1437_v38  ;;  %v2661_v51 = vrot.slane %v2651_v31, %v4839_v50  ;;  %v2668_v20 = vrot.slane %v2652_v10, %v4839_v50  ;;  %v1893_v28 = vrot.slane %v5340_v5, %v4811_v19 }
 0x32f   :  { %v3482_v26 = vrot.slane %v3468_v32, %v4839_v50  ;;  %v2675_v18 = vrot.slane %v2653_v45, %v4839_v50  ;;  %v1897_v6 = vrot.slane %v5340_v5, %v4816_v2  ;;  %v1901_v11 = vrot.slane %v5340_v5, %v4819_v3 }
 0x330   :  { %v2682_v46 = vrot.slane %v2654_v33, %v4839_v50  ;;  %v2683_v37 = vcombine.low %v2661_v51, %v2668_v20  ;;  %v1905_v55 = vrot.slane %v5340_v5, %v4823_v17  ;;  %v1909_v21 = vrot.slane %v5340_v5, %v4826_v60 }
 0x331   :  { %v3483_v57 = vcombine.low %v3475_v62, %v3482_v26  ;;  %v1913_v39 = vrot.slane %v5340_v5, %v4829_v59  ;;  %v1917_v52 = vrot.slane %v5340_v5, %v4836_v36  ;;  %v3386_v42 = vcombine.low %v1889_v25, %v1893_v28 }
 0x332   :  { %v2684_v49 = vcombine.low %v2675_v18, %v2682_v46  ;;  %v2691_v48 = vrot.slane %v2683_v37, %v4839_v50  ;;  %v3387_v1 = vcombine.low %v1897_v6, %v1901_v11  ;;  %v3388_v0 = vcombine.low %v1905_v55, %v1909_v21 }
 0x333   :  { %3670 = vperm.xlu0 %4041, %v3483_v57   ;;  %v3389_v44 = vcombine.low %v1913_v39, %v1917_v52  ;;  %v3396_v16 = vrot.slane %v3386_v42, %v4839_v50  ;;  %v1377_v35 = vrot.slane %v5292_v22, %v4804_v27  ;;  %v1381_v40 = vrot.slane %v5292_v22, %v4811_v19 }
 0x334   :  { %v2698_v23 = vrot.slane %v2684_v49, %v4839_v50  ;;  %v3403_v5 = vrot.slane %v3387_v1, %v4839_v50  ;;  %v3410_v9 = vrot.slane %v3388_v0, %v4839_v50  ;;  %v1385_v63 = vrot.slane %v5292_v22, %v4816_v2 }
 0x335   :  { %v3417_v54 = vrot.slane %v3389_v44, %v4839_v50  ;;  %v1389_v24 = vrot.slane %v5292_v22, %v4819_v3  ;;  %v1393_v43 = vrot.slane %v5292_v22, %v4823_v17  ;;  %v1397_v58 = vrot.slane %v5292_v22, %v4826_v60 }
 0x336   :  { %v2699_v41 = vcombine.low %v2691_v48, %v2698_v23  ;;  %v3418_v14 = vcombine.low %v3396_v16, %v3403_v5  ;;  %v1401_v15 = vrot.slane %v5292_v22, %v4829_v59  ;;  %v1405_v29 = vrot.slane %v5292_v22, %v4836_v36 }
 0x337   :  { %v3419_v53 = vcombine.low %v3410_v9, %v3417_v54  ;;  %v2602_v61 = vcombine.low %v1377_v35, %v1381_v40  ;;  %v2603_v56 = vcombine.low %v1385_v63, %v1389_v24  ;;  %v2604_v4 = vcombine.low %v1393_v43, %v1397_v58 }
 0x338   :  { %3622 = vperm.xlu1 %4040, %v2699_v41   ;;  %v3426_v7 = vrot.slane %v3418_v14, %v4839_v50  ;;  %v2605_v8 = vcombine.low %v1401_v15, %v1405_v29  ;;  %v1441_v34 = vrot.slane %v5370_v12, %v4804_v27  ;;  %v1445_v38 = vrot.slane %v5370_v12, %v4811_v19 }
 0x339   :  { %v3433_v31 = vrot.slane %v3419_v53, %v4839_v50  ;;  %v2612_v10 = vrot.slane %v2602_v61, %v4839_v50  ;;  %v2619_v22 = vrot.slane %v2603_v56, %v4839_v50  ;;  %v2626_v32 = vrot.slane %v2604_v4, %v4839_v50 }
 0x33a   :  { %v2633_v62 = vrot.slane %v2605_v8, %v4839_v50  ;;  %v1449_v45 = vrot.slane %v5370_v12, %v4816_v2  ;;  %v1453_v25 = vrot.slane %v5370_v12, %v4819_v3  ;;  %v1457_v33 = vrot.slane %v5370_v12, %v4823_v17 }
 0x33b   :  { %v3434_v51 = vcombine.low %v3426_v7, %v3433_v31  ;;  %v2634_v20 = vcombine.low %v2612_v10, %v2619_v22  ;;  %v1461_v28 = vrot.slane %v5370_v12, %v4826_v60  ;;  %v1465_v26 = vrot.slane %v5370_v12, %v4829_v59 }
 0x33c   :  { %v2635_v18 = vcombine.low %v2626_v32, %v2633_v62  ;;  %v1469_v6 = vrot.slane %v5370_v12, %v4836_v36  ;;  %v2700_v11 = vcombine.low %v1441_v34, %v1445_v38  ;;  %v2701_v46 = vcombine.low %v1449_v45, %v1453_v25 }
 0x33d   :  { %3667 = vperm.xlu0 %4041, %v3434_v51   ;;  %v2642_v37 = vrot.slane %v2634_v20, %v4839_v50  ;;  %v2702_v55 = vcombine.low %v1457_v33, %v1461_v28  ;;  %v1953_v21 = vrot.slane %v5417_v30, %v4804_v27  ;;  %v1957_v57 = vrot.slane %v5417_v30, %v4811_v19 }
 0x33e   :  { %v2649_v39 = vrot.slane %v2635_v18, %v4839_v50  ;;  %v2703_v52 = vcombine.low %v1465_v26, %v1469_v6  ;;  %v2710_v42 = vrot.slane %v2700_v11, %v4839_v50  ;;  %v2717_v49 = vrot.slane %v2701_v46, %v4839_v50 }
 0x33f   :  { %v2724_v12 = vrot.slane %v2702_v55, %v4839_v50  ;;  %v1961_v48 = vrot.slane %v5417_v30, %v4816_v2  ;;  %v1965_v1 = vrot.slane %v5417_v30, %v4819_v3  ;;  %v1969_v0 = vrot.slane %v5417_v30, %v4823_v17 }
 0x340   :  { %v2650_v44 = vcombine.low %v2642_v37, %v2649_v39  ;;  %v2731_v16 = vrot.slane %v2703_v52, %v4839_v50  ;;  %v2732_v35 = vcombine.low %v2710_v42, %v2717_v49  ;;  %v1973_v40 = vrot.slane %v5417_v30, %v4826_v60 }
 0x341   :  { %v1977_v23 = vrot.slane %v5417_v30, %v4829_v59  ;;  %v1981_v5 = vrot.slane %v5417_v30, %v4836_v36  ;;  %v3484_v9 = vcombine.low %v1953_v21, %v1957_v57  ;;  %v3485_v63 = vcombine.low %v1961_v48, %v1965_v1 }
 0x342   :  { %3619 = vperm.xlu1 %4040, %v2650_v44   ;;  %v2733_v54 = vcombine.low %v2724_v12, %v2731_v16  ;;  %v2740_v24 = vrot.slane %v2732_v35, %v4839_v50  ;;  %v3486_v43 = vcombine.low %v1969_v0, %v1973_v40  ;;  %v1473_v58 = vrot.slane %v5367_v47, %v4804_v27  ;;  %v3587_v35 = vpop.permute.xlu1 %3586 }
 0x343   :  { %v3487_v41 = vcombine.low %v1977_v23, %v1981_v5  ;;  %v3494_v14 = vrot.slane %v3484_v9, %v4839_v50  ;;  %v3501_v15 = vrot.slane %v3485_v63, %v4839_v50  ;;  %v1477_v29 = vrot.slane %v5367_v47, %v4811_v19 }
 0x344   :  { %v2747_v30 = vrot.slane %v2733_v54, %v4839_v50  ;;  %v3508_v53 = vrot.slane %v3486_v43, %v4839_v50  ;;  %v1481_v61 = vrot.slane %v5367_v47, %v4816_v2  ;;  %v1485_v56 = vrot.slane %v5367_v47, %v4819_v3 }
 0x345   :  { %v3515_v4 = vrot.slane %v3487_v41, %v4839_v50  ;;  %v3516_v7 = vcombine.low %v3494_v14, %v3501_v15  ;;  %v1489_v8 = vrot.slane %v5367_v47, %v4823_v17  ;;  %v1493_v34 = vrot.slane %v5367_v47, %v4826_v60 }
 0x346   :  { %v2748_v38 = vcombine.low %v2740_v24, %v2747_v30  ;;  %v1497_v31 = vrot.slane %v5367_v47, %v4829_v59  ;;  %v1501_v10 = vrot.slane %v5367_v47, %v4836_v36  ;;  %v2749_v22 = vcombine.low %v1473_v58, %v1477_v29  ;;  %v3632_v40 = vpop.permute.xlu1 %3631  ;;  %v3635_v58 = vpop.permute.xlu0 %3634 }
 0x347   :  { %v3517_v32 = vcombine.low %v3508_v53, %v3515_v4  ;;  %v3524_v62 = vrot.slane %v3516_v7, %v4839_v50  ;;  %v2750_v45 = vcombine.low %v1481_v61, %v1485_v56  ;;  %v2751_v25 = vcombine.low %v1489_v8, %v1493_v34  ;;  %v5812_v7 = vld [vmem:[#allocation5_spill] sm:$0xff] }
 0x348   :  { %3625 = vperm.xlu1 %4040, %v2748_v38   ;;  %v2752_v33 = vcombine.low %v1497_v31, %v1501_v10  ;;  %v2759_v51 = vrot.slane %v2749_v22, %v4839_v50  ;;  %v1985_v20 = vrot.slane %v5412_v13, %v4804_v27  ;;  %v1989_v28 = vrot.slane %v5412_v13, %v4811_v19  ;;  %v5813_v31 = vld [vmem:[#allocation6_spill] sm:$0xff] }
 0x349   :  { %v3531_v26 = vrot.slane %v3517_v32, %v4839_v50  ;;  %v2766_v47 = vrot.slane %v2750_v45, %v4839_v50  ;;  %v2773_v18 = vrot.slane %v2751_v25, %v4839_v50  ;;  %v1993_v6 = vrot.slane %v5412_v13, %v4816_v2 }
 0x34a   :  { %v2780_v11 = vrot.slane %v2752_v33, %v4839_v50  ;;  %v1997_v46 = vrot.slane %v5412_v13, %v4819_v3  ;;  %v2001_v27 = vrot.slane %v5412_v13, %v4823_v17  ;;  %v2005_v19 = vrot.slane %v5412_v13, %v4826_v60  ;;  %v3593_v23 = vpop.permute.xlu1 %3592  ;;  %v3584_v14 = vpop.permute.xlu0 %3583 }
 0x34b   :  { %v3532_v37 = vcombine.low %v3524_v62, %v3531_v26  ;;  %v2781_v55 = vcombine.low %v2759_v51, %v2766_v47  ;;  %v2009_v21 = vrot.slane %v5412_v13, %v4829_v59  ;;  %v2013_v57 = vrot.slane %v5412_v13, %v4836_v36 }
 0x34c   :  { %v2782_v2 = vcombine.low %v2773_v18, %v2780_v11  ;;  %v3533_v39 = vcombine.low %v1985_v20, %v1989_v28  ;;  %v3534_v52 = vcombine.low %v1993_v6, %v1997_v46  ;;  %v3535_v42 = vcombine.low %v2001_v27, %v2005_v19 }
 0x34d   :  { %3673 = vperm.xlu0 %4041, %v3532_v37   ;;  %v2789_v3 = vrot.slane %v2781_v55, %v4839_v50  ;;  %v3536_v49 = vcombine.low %v2009_v21, %v2013_v57  ;;  %v3682_v8 = vadd.s32 4294967288, %v5812_v7  ;;  %v3689_v34 = vadd.s32 4294967280, %v5812_v7 }
 0x34e   :  { %v2796_v17 = vrot.slane %v2782_v2, %v4839_v50  ;;  %v3543_v60 = vrot.slane %v3533_v39, %v4839_v50  ;;  %v3550_v12 = vrot.slane %v3534_v52, %v4839_v50  ;;  %v3557_v48 = vrot.slane %v3535_v42, %v4839_v50  ;;  %v3590_v5 = vpop.permute.xlu1 %3589  ;;  %v3641_v29 = vpop.permute.xlu0 %3640 }
 0x34f   :  { %v3564_v59 = vrot.slane %v3536_v49, %v4839_v50  ;;  %v3680_v10 = vsub.s32 %v5812_v7, %v5813_v31  ;;  %v3696_v22 = vadd.s32 4294967272, %v5812_v7  ;;  %v3685_v32 = vsub.s32 %v3682_v8, %v5813_v31 }
 0x350   :  { %v2797_v1 = vcombine.low %v2789_v3, %v2796_v17  ;;  %v3565_v36 = vcombine.low %v3543_v60, %v3550_v12  ;;  %v3692_v62 = vsub.s32 %v3689_v34, %v5813_v31  ;;  %v3703_v45 = vadd.s32 4294967264, %v5812_v7 }
 0x351   :  { %v3566_v13 = vcombine.low %v3557_v48, %v3564_v59  ;;  %v3681_v33 = vrot.slane %v3584_v14, %v3680_v10  ;;  %v3790_v51 = vrot.slane %v3632_v40, %v3680_v10  ;;  %v3699_v20 = vsub.s32 %v3696_v22, %v5813_v31 }
 0x352   :  { %3628 = vperm.xlu1 %4040, %v2797_v1   ;;  %v3573_v0 = vrot.slane %v3565_v36, %v4839_v50  ;;  %v3638_v9 = vpop.permute.xlu1 %3637  ;;  %v3686_v26 = vrot.slane %v3587_v35, %v3685_v32  ;;  %v3693_v47 = vrot.slane %v3590_v5, %v3692_v62  ;;  %v3706_v18 = vsub.s32 %v3703_v45, %v5813_v31 }
 0x353   :  { %v3580_v44 = vrot.slane %v3566_v13, %v4839_v50  ;;  %v3717_v6 = vadd.s32 4294967248, %v5812_v7  ;;  %v3794_v46 = vrot.slane %v3635_v58, %v3685_v32  ;;  %v3799_v27 = vrot.slane %v3638_v9, %v3692_v62 }
 0x354   :  { %v3710_v19 = vadd.s32 4294967256, %v5812_v7  ;;  %v3688_v37 = vsel %vm3687_vm1, %v3686_v26, %v3681_v33  ;;  %v3700_v21 = vrot.slane %v3593_v23, %v3699_v20  ;;  %v3731_v52 = vadd.s32 4294967232, %v5812_v7 }
 0x355   :  { %v3581_v16 = vcombine.low %v3573_v0, %v3580_v44  ;;  %v3795_v55 = vsel %vm3687_vm1, %v3794_v46, %v3790_v51  ;;  %v3695_v57 = vsel %vm3694_vm2, %v3693_v47, %v3688_v37  ;;  %v3720_v39 = vsub.s32 %v3717_v6, %v5813_v31 }
 0x356   :  { %v5674_v30 = vpop.permute.xlu0 %3646  ;;  %v3800_v42 = vsel %vm3694_vm2, %v3799_v27, %v3795_v55  ;;  %v3713_v3 = vsub.s32 %v3710_v19, %v5813_v31  ;;  %v3724_v49 = vadd.s32 4294967240, %v5812_v7  ;;  %v3804_v60 = vrot.slane %v3641_v29, %v3699_v20 }
 0x357   :  { %3676 = vperm.xlu0 %4041, %v3581_v16   ;;  %v3702_v59 = vsel %vm3701_vm3, %v3700_v21, %v3695_v57  ;;  %v3734_v0 = vsub.s32 %v3731_v52, %v5813_v31  ;;  %v3738_v35 = vadd.s32 4294967224, %v5812_v7  ;;  %v3745_v5 = vadd.s32 4294967216, %v5812_v7 }
 0x358   :  { %v3805_v36 = vsel %vm3701_vm3, %v3804_v60, %v3800_v42  ;;  %v3727_v16 = vsub.s32 %v3724_v49, %v5813_v31  ;;  %v3814_v9 = vrot.slane %v5674_v30, %v3713_v3  ;;  %v3759_v10 = vadd.s32 4294967200, %v5812_v7 }
 0x359   :  { %v3741_v29 = vsub.s32 %v3738_v35, %v5813_v31  ;;  %v3748_v34 = vsub.s32 %v3745_v5, %v5813_v31  ;;  %v3752_v32 = vadd.s32 4294967208, %v5812_v7  ;;  %v3773_v45 = vadd.s32 4294967184, %v5812_v7 }
 0x35a   :  { %v3780_v20 = vadd.s32 4294967176, %v5812_v7  ;;  %v3762_v47 = vsub.s32 %v3759_v10, %v5813_v31  ;;  %v5814_v5 = vlaneseq }
 0x35b   :  { %v5664_v63 = vpop.permute.xlu1 %3598  ;;  %v3776_v37 = vsub.s32 %v3773_v45, %v5813_v31 }
 0x35c   :  { %v3714_v44 = vrot.slane %v5664_v63, %v3713_v3  ;;  %v3783_v57 = vsub.s32 %v3780_v20, %v5813_v31  ;;  %vm3883_vm0 = vcmp.lt.s32.totalorder %v5814_v5, 256 }
 0x362   :  { %v3596_v54 = vpop.permute.xlu1 %3595 }
 0x363   :  { %v3707_v2 = vrot.slane %v3596_v54, %v3706_v18 }
 0x365   :  { %v3709_v1 = vsel %vm3708_vm4, %v3707_v2, %v3702_v59 }
 0x366   :  { %v3716_v54 = vsel %vm3715_vm5, %v3714_v44, %v3709_v1 }
 0x368   :  { %v5666_v24 = vpop.permute.xlu1 %3643 }
 0x369   :  { %v3809_v12 = vrot.slane %v5666_v24, %v3706_v18 }
 0x36b   :  { %v3810_v40 = vsel %vm3708_vm4, %v3809_v12, %v3805_v36 }
 0x36c   :  { %v3815_v8 = vsel %vm3715_vm5, %v3814_v9, %v3810_v40 }
 0x36e   :  { %v5678_v61 = vpop.permute.xlu0 %3652 }
 0x36f   :  { %v3824_v22 = vrot.slane %v5678_v61, %v3727_v16 }
 0x373   :  { %v5668_v43 = vpop.permute.xlu1 %3604 }
 0x374   :  { %v3728_v14 = vrot.slane %v5668_v43, %v3727_v16 }
 0x37a   :  { %v5682_v4 = vpop.permute.xlu0 %3610 }
 0x37b   :  { %v3742_v33 = vrot.slane %v5682_v4, %v3741_v29  ;;  %v3766_v4 = vadd.s32 4294967192, %v5812_v7 }
 0x37d   :  { %v3769_v42 = vsub.s32 %v3766_v4, %v5813_v31 }
 0x37f   :  { %v5670_v41 = vpop.permute.xlu1 %3601 }
 0x380   :  { %v3721_v13 = vrot.slane %v5670_v41, %v3720_v39 }
 0x382   :  { %v3723_v58 = vsel %vm3722_vm6, %v3721_v13, %v3716_v54 }
 0x386   :  { %v5694_v25 = vpop.permute.xlu0 %3658 }
 0x387   :  { %v3834_v6 = vrot.slane %v5694_v25, %v3741_v29 }
 0x38a   :  { %v5672_v15 = vpop.permute.xlu1 %3649 }
 0x38b   :  { %v3819_v23 = vrot.slane %v5672_v15, %v3720_v39 }
 0x38d   :  { %v3820_v15 = vsel %vm3722_vm6, %v3819_v23, %v3815_v8 }
 0x390   :  { %v5676_v53 = vpop.permute.xlu1 %3607 }
 0x391   :  { %v3735_v63 = vrot.slane %v5676_v53, %v3734_v0  ;;  %v3730_v53 = vsel %vm3729_vm7, %v3728_v14, %v3723_v58 }
 0x393   :  { %v3737_v43 = vsel %vm3736_vm8, %v3735_v63, %v3730_v53 }
 0x394   :  { %v3744_v46 = vsel %vm3743_vm9, %v3742_v33, %v3737_v43 }
 0x397   :  { %v5701_v11 = vpop.permute.xlu0 %3664 }
 0x39c   :  { %v5680_v56 = vpop.permute.xlu1 %3655 }
 0x39d   :  { %v3829_v30 = vrot.slane %v5680_v56, %v3734_v0  ;;  %v3825_v56 = vsel %vm3729_vm7, %v3824_v22, %v3820_v15 }
 0x39f   :  { %v3830_v61 = vsel %vm3736_vm8, %v3829_v30, %v3825_v56 }
 0x3a0   :  { %v3835_v21 = vsel %vm3743_vm9, %v3834_v6, %v3830_v61 }
 0x3a2   :  { %v5686_v38 = vpop.permute.xlu1 %3616 }
 0x3a7   :  { %v3662_v48 = vpop.permute.xlu0 %3661 }
 0x3a8   :  { %v3839_v26 = vrot.slane %v3662_v48, %v3748_v34 }
 0x3aa   :  { %v3840_v2 = vsel %vm3750_vm10, %v3839_v26, %v3835_v21 }
 0x3ac   :  { %v5697_v28 = vpop.permute.xlu1 %3613 }
 0x3ad   :  { %v3749_v62 = vrot.slane %v5697_v28, %v3748_v34  ;;  %v3755_v28 = vsub.s32 %v3752_v32, %v5813_v31 }
 0x3af   :  { %v3751_v27 = vsel %vm3750_vm10, %v3749_v62, %v3744_v46  ;;  %v3756_v55 = vrot.slane %v5686_v38, %v3755_v28  ;;  %v3844_v52 = vrot.slane %v5701_v11, %v3755_v28 }
 0x3b1   :  { %v3758_v7 = vsel %vm3757_vm11, %v3756_v55, %v3751_v27  ;;  %v3845_v38 = vsel %vm3757_vm11, %v3844_v52, %v3840_v2 }
 0x3b2   :  { %v3671_v41 = vpop.permute.xlu0 %3670 }
 0x3b3   :  { %v3854_v36 = vrot.slane %v3671_v41, %v3769_v42 }
 0x3b7   :  { %v5708_v17 = vpop.permute.xlu1 %3622 }
 0x3b8   :  { %v3770_v12 = vrot.slane %v5708_v17, %v3769_v42 }
 0x3bc   :  { %v3668_v18 = vpop.permute.xlu0 %3667 }
 0x3bd   :  { %v3849_v39 = vrot.slane %v3668_v18, %v3762_v47 }
 0x3bf   :  { %v3850_v59 = vsel %vm3764_vm12, %v3849_v39, %v3845_v38 }
 0x3c0   :  { %v3855_v44 = vsel %vm3771_vm14, %v3854_v36, %v3850_v59 }
 0x3c1   :  { %v3620_v24 = vpop.permute.xlu1 %3619 }
 0x3c2   :  { %v3763_v19 = vrot.slane %v3620_v24, %v3762_v47 }
 0x3c4   :  { %v3765_v49 = vsel %vm3764_vm12, %v3763_v19, %v3758_v7 }
 0x3c5   :  { %v3772_v13 = vsel %vm3771_vm14, %v3770_v12, %v3765_v49 }
 0x3c7   :  { %v3626_v51 = vpop.permute.xlu1 %3625 }
 0x3c8   :  { %v3777_v60 = vrot.slane %v3626_v51, %v3776_v37 }
 0x3ca   :  { %v3779_v0 = vsel %vm3778_vm13, %v3777_v60, %v3772_v13 }
 0x3cc   :  { %v3674_v25 = vpop.permute.xlu0 %3673 }
 0x3cd   :  { %v3859_v1 = vrot.slane %v3674_v25, %v3776_v37 }
 0x3cf   :  { %v3860_v35 = vsel %vm3778_vm13, %v3859_v1, %v3855_v44 }
 0x3d1   :  { %v3629_v3 = vpop.permute.xlu1 %3628 }
 0x3d2   :  { %v3784_v48 = vrot.slane %v3629_v3, %v3783_v57 }
 0x3d4   :  { %v3786_v31 = vsel %vm3785_vm15, %v3784_v48, %v3779_v0 }
 0x3d6   :  { %v3677_v11 = vpop.permute.xlu0 %3676 }
 0x3d7   :  { %v3864_v16 = vrot.slane %v3677_v11, %v3783_v57 }
 0x3d9   :  { %v3865_v40 = vsel %vm3785_vm15, %v3864_v16, %v3860_v35 }
 0x3da   :  { %v3866_v23 = vcombine.low %v3786_v31, %v3865_v40 }
 0x3dc   :  { %v3873_v17 = vrot.slane %v3866_v23, %v4839_v50 }
 0x3de   :  { %v3880_v9 = vrot.slane %v3873_v17, %v4839_v50 }
 0x3e0   :  { %3885 = vst.msk [vmem:[#allocation2] sm:$0x3] %vm3883_vm0, %v3880_v9 }
 0x3e1   :  { %4053 = shalt.err (!%p4050_p4)
}
 0x3e2   :  { %s4054_s5 = scalar_lea.hbm %s5773_s3, 32 }
 0x3e3   :  { %p4055_p5 = scmp.ne.s32.totalorder %s5773_s3, %s4054_s5  ;;  %p4058_p6 = scmp.lt.u32.totalorder %s4054_s5, %s5773_s3 }
 0x3e5   :  { %p4060_p7 = pnand %p4058_p6, %p4055_p5 }
 0x3e7   :  { %4063 = shalt.err (!%p4060_p7)
}
 0x3e8   :  { %3895 = dma.vmem_to_hbm [thread:$0]  %s3893_s2, 32, %s5773_s3, [#allocation3]  }
 0x3e9   :  { %4064 = dma.done.wait [#allocation3], 32  }
 0x3ea   :  { %4065 = vsyncadd [#allocation3], 4294967264 }
 0x3eb   :  { %3899 = vsyncpa [#allocation3], 1 }

</bundles_post_ra>
